<compile_context>
chip_gen: v7x
topology: tpu7x:2x2x1
jax: 0.10.0
libtpu: 0.0.40
codegen_flags: <defaults>
</compile_context>

<pallas_src>
import jax
import jax.numpy as jnp
from jax.experimental import pallas as pl
from jax.experimental.pallas import tpu as pltpu

_BN_EPS = 1e-5


# ----------------------------------------------------------------------------
# Wrapper-side glue: zero-pad + phase (space-to-depth) split so a 3x3 stride-s
# conv becomes unit-stride windowed reads in-kernel.  One extra phase-row of
# zeros is added above and below so the conv2 halo rows (conv1 rows -1 / Ho)
# can be computed with in-bounds reads (they are masked to zero in-kernel).
# ----------------------------------------------------------------------------
def _phase_decompose(x_nhwc, stride, pad=1):
    n, h, w, c = x_nhwc.shape
    s = stride
    ho = (h + 2 * pad - 3) // s + 1
    wo = (w + 2 * pad - 3) // s + 1
    halo = -(-2 // s)                       # ceil(2/s): 2 for s=1, 1 for s=2
    hph, wph = ho + halo, wo + halo
    xp = jnp.pad(x_nhwc, ((0, 0),
                          (pad + s, s * (hph + 1) - h - pad),
                          (pad, s * wph - w - pad),
                          (0, 0)))
    xp = xp.reshape(n, hph + 2, s, wph, s, c).transpose(0, 2, 4, 1, 3, 5)
    return xp.reshape(n, s * s, hph + 2, wph, c), ho, wo


def _fold_bn(bn_p):
    inv = 1.0 / jnp.sqrt(bn_p["var"].astype(jnp.float32) + _BN_EPS)
    sc = bn_p["gamma"].astype(jnp.float32) * inv
    bi = bn_p["beta"].astype(jnp.float32) - bn_p["mean"].astype(jnp.float32) * sc
    return sc.reshape(1, -1), bi.reshape(1, -1)


# ----------------------------------------------------------------------------
# Fused BasicBlock kernel (one (batch, row-band) tile per grid step)
# ----------------------------------------------------------------------------
def _make_basic_block_kernel(s, th2, ho, wo, cin, cmid, cout, *,
                             proj_shortcut, compute_dtype):
    n1 = th2 + 2                    # conv1 rows per band (incl. conv2 halo)
    tm = th2 * wo
    qc = 1 // s                     # center-tap phase-coord offset
    pc = (1 % s) * s + (1 % s)      # center-tap phase index

    def kernel(*refs):
        idx = 0
        x_ref = refs[idx]; idx += 1        # (1, s*s, Hph+2, Wph, Cin)
        w1_ref = refs[idx]; idx += 1       # (9*Cin, Cmid)   packed taps in K
        s1_ref = refs[idx]; idx += 1       # (1, Cmid) folded BN scale
        b1_ref = refs[idx]; idx += 1       # (1, Cmid) folded BN bias
        w2_ref = refs[idx]; idx += 1       # (9*Cmid, Cout)
        s2_ref = refs[idx]; idx += 1       # (1, Cout)
        b2_ref = refs[idx]; idx += 1       # (1, Cout)
        if proj_shortcut:
            wsc_ref = refs[idx]; idx += 1  # (Cin, Cout)
            ssc_ref = refs[idx]; idx += 1  # (1, Cout)
            bsc_ref = refs[idx]; idx += 1  # (1, Cout)
        o_ref = refs[idx]; idx += 1        # (1, TM, Cout)
        p1_ref = refs[idx]; idx += 1       # VMEM scratch (N1*Wo, 9*Cin)
        h1_ref = refs[idx]; idx += 1       # VMEM scratch (N1, Wo+2, Cmid)
        p2_ref = refs[idx]; idx += 1       # VMEM scratch (TM, 9*Cmid)

        j = pl.program_id(1)
        r1lo = j * th2 - 1                 # global conv1 row of band row 0

        # ---- conv1 (3x3, stride s) + bn1 + relu over th2+2 rows -------------
        # Build the packed im2col patch in VMEM (one big-K GEMM, no 9-dot
        # accumulator chain, no inflated patch tensor in HBM).
        for dy in range(3):
            for dx in range(3):
                p = (dy % s) * s + (dx % s)
                qy, qx = dy // s, dx // s
                win = x_ref[0, p, pl.ds(j * th2 + qy, n1), qx:qx + wo, :]
                t = dy * 3 + dx
                p1_ref[:, t * cin:(t + 1) * cin] = win.reshape(n1 * wo, cin)

        h1 = jnp.dot(p1_ref[...], w1_ref[...],
                     preferred_element_type=jnp.float32)
        h1 = jnp.maximum(h1 * s1_ref[...] + b1_ref[...], 0.0)
        h1 = h1.reshape(n1, wo, cmid)
        # conv2 sees zero padding at conv1 rows -1 and Ho: mask the halo rows
        # of this band that fall outside the image.
        row = r1lo + jax.lax.broadcasted_iota(jnp.int32, (n1, 1, 1), 0)
        h1 = jnp.where(jnp.logical_and(row >= 0, row < ho), h1, 0.0)
        h1 = h1.astype(compute_dtype)

        # Stage h1 into the zero-bordered VMEM scratch (never touches HBM).
        zcol = jnp.zeros((n1, 1, cmid), compute_dtype)
        h1_ref[:, 0:1, :] = zcol                 # conv2 left zero pad
        h1_ref[:, wo + 1:wo + 2, :] = zcol       # conv2 right zero pad
        h1_ref[:, 1:wo + 1, :] = h1

        # ---- conv2 (3x3, stride 1) + bn2 ------------------------------------
        for dy in range(3):
            for dx in range(3):
                t = dy * 3 + dx
                win = h1_ref[dy:dy + th2, dx:dx + wo, :]
                p2_ref[:, t * cmid:(t + 1) * cmid] = win.reshape(tm, cmid)

        acc = jnp.dot(p2_ref[...], w2_ref[...],
                      preferred_element_type=jnp.float32)
        acc = acc * s2_ref[...] + b2_ref[...]

        # ---- shortcut: reuses the input tile already resident in VMEM -------
        xc = x_ref[0, pc, pl.ds(j * th2 + qc + 1, th2), qc:qc + wo, :]
        if proj_shortcut:                        # 1x1 stride-s conv + BN
            res = jnp.dot(xc.reshape(tm, cin), wsc_ref[...],
                          preferred_element_type=jnp.float32)
            res = res * ssc_ref[...] + bsc_ref[...]
        else:                                    # identity: no matmul / no HBM
            res = xc.reshape(tm, cout).astype(jnp.float32)

        o_ref[0] = jnp.maximum(acc + res, 0.0).astype(o_ref.dtype)

    return kernel


# ----------------------------------------------------------------------------
# Wrapper: BasicBlock forward (eval-mode BN folded into scale/bias)
# ----------------------------------------------------------------------------
def basic_block_forward(x_nchw, params, stride, *,
                        compute_dtype=jnp.bfloat16, out_dtype=jnp.float32,
                        tm_target=512):
    n, cin, h, w = x_nchw.shape
    cmid = params["w1"].shape[-1]
    cout = params["w2"].shape[-1]
    proj = "w_sc" in params
    assert proj or (stride == 1 and cin == cout), "identity shortcut shape"

    x = jnp.transpose(x_nchw, (0, 2, 3, 1))          # NCHW -> NHWC (boundary)
    x_ph, ho, wo = _phase_decompose(x.astype(compute_dtype), stride)
    _, pp, hph2, wph, _ = x_ph.shape
    mo = ho * wo

    # Row-band tile over output rows: largest divisor of Ho whose (tile, Cout)
    # block is sublane-aligned and <= tm_target rows.  (th2 == Ho fallback is
    # always legal: the block then covers the full M extent.)
    th2 = ho
    for cand in range(ho, 0, -1):
        if ho % cand == 0 and cand * wo <= tm_target and (cand * wo) % 8 == 0:
            th2 = cand
            break
    nb = ho // th2
    tm = th2 * wo
    n1 = th2 + 2

    s1, b1 = _fold_bn(params["bn1"])
    s2, b2 = _fold_bn(params["bn2"])
    w1p = params["w1"].reshape(9 * cin, cmid).astype(compute_dtype)
    w2p = params["w2"].reshape(9 * cmid, cout).astype(compute_dtype)

    in_specs = [
        # Phase-decomposed input image: resident in VMEM across the row bands.
        pl.BlockSpec((1, pp, hph2, wph, cin), lambda i, j: (i, 0, 0, 0, 0)),
        # Packed weights / folded BN affine: resident for the whole grid.
        pl.BlockSpec((9 * cin, cmid), lambda i, j: (0, 0)),
        pl.BlockSpec((1, cmid), lambda i, j: (0, 0)),
        pl.BlockSpec((1, cmid), lambda i, j: (0, 0)),
        pl.BlockSpec((9 * cmid, cout), lambda i, j: (0, 0)),
        pl.BlockSpec((1, cout), lambda i, j: (0, 0)),
        pl.BlockSpec((1, cout), lambda i, j: (0, 0)),
    ]
    args = [x_ph, w1p, s1, b1, w2p, s2, b2]
    if proj:
        wsc = params["w_sc"].reshape(cin, cout).astype(compute_dtype)
        ssc, bsc = _fold_bn(params["bn_sc"])
        in_specs += [pl.BlockSpec((cin, cout), lambda i, j: (0, 0)),
                     pl.BlockSpec((1, cout), lambda i, j: (0, 0)),
                     pl.BlockSpec((1, cout), lambda i, j: (0, 0))]
        args += [wsc, ssc, bsc]

    out = pl.pallas_call(
        _make_basic_block_kernel(stride, th2, ho, wo, cin, cmid, cout,
                                 proj_shortcut=proj,
                                 compute_dtype=compute_dtype),
        grid=(n, nb),
        in_specs=in_specs,
        out_specs=pl.BlockSpec((1, tm, cout), lambda i, j: (i, j, 0)),
        out_shape=jax.ShapeDtypeStruct((n, mo, cout), out_dtype),
        scratch_shapes=[
            pltpu.VMEM((n1 * wo, 9 * cin), compute_dtype),   # conv1 im2col
            pltpu.VMEM((n1, wo + 2, cmid), compute_dtype),   # h1 (conv2 input)
            pltpu.VMEM((tm, 9 * cmid), compute_dtype),       # conv2 im2col
        ],
        compiler_params=pltpu.CompilerParams(
            dimension_semantics=("parallel", "parallel"),
            vmem_limit_bytes=64 * 1024 * 1024),   # <= physical on v5e/v6e/v7x
    )(*args)

    out = out.reshape(n, ho, wo, cout)
    return jnp.transpose(out, (0, 3, 1, 2))          # NHWC -> NCHW (boundary)


# ----------------------------------------------------------------------------
# BasicBlock parameters (deterministic, synthetic)
# ----------------------------------------------------------------------------
def init_basic_block_params(key, in_channels, out_channels, stride):
    ks = jax.random.split(key, 16)

    def conv_w(k, kh, kw, ci, co):
        fan_in = kh * kw * ci
        return jax.random.normal(k, (kh, kw, ci, co), jnp.float32) / jnp.sqrt(fan_in)

    def bn(k0, k1, k2, k3, c):
        return dict(
            gamma=1.0 + 0.1 * jax.random.normal(k0, (c,), jnp.float32),
            beta=0.1 * jax.random.normal(k1, (c,), jnp.float32),
            mean=0.1 * jax.random.normal(k2, (c,), jnp.float32),
            var=0.5 + jax.random.uniform(k3, (c,), jnp.float32),
        )

    params = dict(
        w1=conv_w(ks[0], 3, 3, in_channels, out_channels),
        bn1=bn(ks[1], ks[2], ks[3], ks[4], out_channels),
        w2=conv_w(ks[5], 3, 3, out_channels, out_channels),
        bn2=bn(ks[6], ks[7], ks[8], ks[9], out_channels),
    )
    if stride != 1 or in_channels != out_channels:     # expansion == 1
        params["w_sc"] = conv_w(ks[10], 1, 1, in_channels, out_channels)
        params["bn_sc"] = bn(ks[11], ks[12], ks[13], ks[14], out_channels)
    return params


# ----------------------------------------------------------------------------
# Pure-JAX reference (correctness check only)
# ----------------------------------------------------------------------------
def _ref_conv_bn(x_nchw, w_hwio, bn, stride, pad, relu=False, residual=None):
    y = jax.lax.conv_general_dilated(
        x_nchw, w_hwio, window_strides=(stride, stride),
        padding=((pad, pad), (pad, pad)),
        dimension_numbers=("NCHW", "HWIO", "NCHW"))
    scale = bn["gamma"] / jnp.sqrt(bn["var"] + _BN_EPS)
    bias = bn["beta"] - bn["mean"] * scale
    y = y * scale[None, :, None, None] + bias[None, :, None, None]
    if residual is not None:
        y = y + residual
    if relu:
        y = jnp.maximum(y, 0.0)
    return y


def basic_block_ref(x_nchw, params, stride):
    if "w_sc" in params:
        sc = _ref_conv_bn(x_nchw, params["w_sc"], params["bn_sc"], stride, 0)
    else:
        sc = x_nchw
    h = _ref_conv_bn(x_nchw, params["w1"], params["bn1"], stride, 1, relu=True)
    return _ref_conv_bn(h, params["w2"], params["bn2"], 1, 1, relu=True,
                        residual=sc)


def _run_case(name, key, n, cin, cout, hw, stride):
    kx, kp = jax.random.split(key)
    x = jax.random.normal(kx, (n, cin, hw, hw), jnp.float32)   # NCHW like torch
    params = init_basic_block_params(kp, cin, cout, stride)
    ref = jax.block_until_ready(basic_block_ref(x, params, stride))

    # 1) f32 path with small row bands: exercises the multi-band halo/mask
    #    logic and the dynamic row-offset windows; tight tolerance.
    out_f32 = jax.block_until_ready(jax.jit(
        lambda a, p: basic_block_forward(a, p, stride,
                                         compute_dtype=jnp.float32,
                                         tm_target=32))(x, params))
    assert out_f32.shape == ref.shape, (name, out_f32.shape, ref.shape)
    assert jnp.allclose(out_f32, ref, rtol=1e-4, atol=1e-4), \
        (name, float(jnp.max(jnp.abs(out_f32 - ref))))

    # 2) default fast path: bf16 activations/weights, f32 MXU accumulation.
    out_bf16 = jax.block_until_ready(jax.jit(
        lambda a, p: basic_block_forward(a, p, stride))(x, params))
    assert out_bf16.shape == ref.shape, (name, out_bf16.shape, ref.shape)
    assert jnp.allclose(out_bf16, ref, rtol=5e-2, atol=5e-2), \
        (name, float(jnp.max(jnp.abs(out_bf16 - ref))))


if __name__ == "__main__":
    key = jax.random.PRNGKey(0)
    k1, k2 = jax.random.split(key)
    # Projection (1x1 conv + BN) shortcut path: stride 2, channel expansion.
    _run_case("proj_stride2", k1, n=2, cin=4, cout=8, hw=16, stride=2)
    # Identity shortcut path: stride 1, same channels (no matmul residual).
    _run_case("identity_stride1", k2, n=2, cin=8, cout=8, hw=16, stride=1)
    print("KERNEL_OK")
</pallas_src>

<mosaic_0001>
module attributes {stable_mosaic.version = 11 : i64} {
  func.func @kernel(%arg0: i32, %arg1: i32, %arg2: memref<1x4x11x9x4xf32, #tpu.memory_space<vmem>>, %arg3: memref<36x8xf32, #tpu.memory_space<vmem>>, %arg4: memref<1x8xf32, #tpu.memory_space<vmem>>, %arg5: memref<1x8xf32, #tpu.memory_space<vmem>>, %arg6: memref<72x8xf32, #tpu.memory_space<vmem>>, %arg7: memref<1x8xf32, #tpu.memory_space<vmem>>, %arg8: memref<1x8xf32, #tpu.memory_space<vmem>>, %arg9: memref<4x8xf32, #tpu.memory_space<vmem>>, %arg10: memref<1x8xf32, #tpu.memory_space<vmem>>, %arg11: memref<1x8xf32, #tpu.memory_space<vmem>>, %arg12: memref<1x32x8xf32, #tpu.memory_space<vmem>>, %arg13: memref<48x36xf32, #tpu.memory_space<vmem>>, %arg14: memref<6x10x8xf32, #tpu.memory_space<vmem>>, %arg15: memref<32x72xf32, #tpu.memory_space<vmem>>) attributes {dimension_semantics = [#tpu.dimension_semantics<parallel>, #tpu.dimension_semantics<parallel>], iteration_bounds = array<i64: 2, 2>, scalar_prefetch = 0 : i64, scratch_operands = 3 : i64, tpu.core_type = #tpu.core_type<tc>, window_params = [{transform_indices = @transform_0, window_bounds = array<i64: 1, 4, 11, 9, 4>}, {pipeline_mode = #tpu.pipeline_mode<synchronous>, transform_indices = @transform_1, window_bounds = array<i64: 36, 8>}, {pipeline_mode = #tpu.pipeline_mode<synchronous>, transform_indices = @transform_2, window_bounds = array<i64: 1, 8>}, {pipeline_mode = #tpu.pipeline_mode<synchronous>, transform_indices = @transform_3, window_bounds = array<i64: 1, 8>}, {pipeline_mode = #tpu.pipeline_mode<synchronous>, transform_indices = @transform_4, window_bounds = array<i64: 72, 8>}, {pipeline_mode = #tpu.pipeline_mode<synchronous>, transform_indices = @transform_5, window_bounds = array<i64: 1, 8>}, {pipeline_mode = #tpu.pipeline_mode<synchronous>, transform_indices = @transform_6, window_bounds = array<i64: 1, 8>}, {pipeline_mode = #tpu.pipeline_mode<synchronous>, transform_indices = @transform_7, window_bounds = array<i64: 4, 8>}, {pipeline_mode = #tpu.pipeline_mode<synchronous>, transform_indices = @transform_8, window_bounds = array<i64: 1, 8>}, {pipeline_mode = #tpu.pipeline_mode<synchronous>, transform_indices = @transform_9, window_bounds = array<i64: 1, 8>}, {transform_indices = @transform_10, window_bounds = array<i64: 1, 32, 8>}]} {
    %c4_i32 = arith.constant 4 : i32
    %0 = arith.muli %arg1, %c4_i32 : i32
    %c1_i32 = arith.constant 1 : i32
    %1 = arith.subi %0, %c1_i32 : i32
    %c4_i32_0 = arith.constant 4 : i32
    %2 = arith.muli %arg1, %c4_i32_0 : i32
    %c0_i32 = arith.constant 0 : i32
    %3 = arith.addi %2, %c0_i32 : i32
    %c0 = arith.constant 0 : index
    %c0_1 = arith.constant 0 : index
    %4 = arith.index_cast %3 : i32 to index
    %c0_2 = arith.constant 0 : index
    %c0_3 = arith.constant 0 : index
    %5 = vector.load %arg2[%c0, %c0_1, %4, %c0_2, %c0_3] : memref<1x4x11x9x4xf32, #tpu.memory_space<vmem>>, vector<1x1x6x8x4xf32>
    %6 = vector.shape_cast %5 : vector<1x1x6x8x4xf32> to vector<6x8x4xf32>
    %7 = vector.shape_cast %6 : vector<6x8x4xf32> to vector<48x4xf32>
    %c0_4 = arith.constant 0 : index
    %c0_5 = arith.constant 0 : index
    %8 = vector.load %arg13[%c0_4, %c0_5] : memref<48x36xf32, #tpu.memory_space<vmem>>, vector<48x4xf32>
    tpu.vector_store %arg13[%c0_4, %c0_5], %7 {strides = array<i32>} : memref<48x36xf32, #tpu.memory_space<vmem>>, vector<48x4xf32>,
    %c4_i32_6 = arith.constant 4 : i32
    %9 = arith.muli %arg1, %c4_i32_6 : i32
    %c0_i32_7 = arith.constant 0 : i32
    %10 = arith.addi %9, %c0_i32_7 : i32
    %c0_8 = arith.constant 0 : index
    %c1 = arith.constant 1 : index
    %11 = arith.index_cast %10 : i32 to index
    %c0_9 = arith.constant 0 : index
    %c0_10 = arith.constant 0 : index
    %12 = vector.load %arg2[%c0_8, %c1, %11, %c0_9, %c0_10] : memref<1x4x11x9x4xf32, #tpu.memory_space<vmem>>, vector<1x1x6x8x4xf32>
    %13 = vector.shape_cast %12 : vector<1x1x6x8x4xf32> to vector<6x8x4xf32>
    %14 = vector.shape_cast %13 : vector<6x8x4xf32> to vector<48x4xf32>
    %c0_11 = arith.constant 0 : index
    %c4 = arith.constant 4 : index
    %15 = vector.load %arg13[%c0_11, %c4] : memref<48x36xf32, #tpu.memory_space<vmem>>, vector<48x4xf32>
    tpu.vector_store %arg13[%c0_11, %c4], %14 {strides = array<i32>} : memref<48x36xf32, #tpu.memory_space<vmem>>, vector<48x4xf32>,
    %c4_i32_12 = arith.constant 4 : i32
    %16 = arith.muli %arg1, %c4_i32_12 : i32
    %c0_i32_13 = arith.constant 0 : i32
    %17 = arith.addi %16, %c0_i32_13 : i32
    %c0_14 = arith.constant 0 : index
    %c0_15 = arith.constant 0 : index
    %18 = arith.index_cast %17 : i32 to index
    %c1_16 = arith.constant 1 : index
    %c0_17 = arith.constant 0 : index
    %19 = vector.load %arg2[%c0_14, %c0_15, %18, %c1_16, %c0_17] : memref<1x4x11x9x4xf32, #tpu.memory_space<vmem>>, vector<1x1x6x8x4xf32>
    %20 = vector.shape_cast %19 : vector<1x1x6x8x4xf32> to vector<6x8x4xf32>
    %21 = vector.shape_cast %20 : vector<6x8x4xf32> to vector<48x4xf32>
    %c0_18 = arith.constant 0 : index
    %c8 = arith.constant 8 : index
    %22 = vector.load %arg13[%c0_18, %c8] : memref<48x36xf32, #tpu.memory_space<vmem>>, vector<48x4xf32>
    tpu.vector_store %arg13[%c0_18, %c8], %21 {strides = array<i32>} : memref<48x36xf32, #tpu.memory_space<vmem>>, vector<48x4xf32>,
    %c4_i32_19 = arith.constant 4 : i32
    %23 = arith.muli %arg1, %c4_i32_19 : i32
    %c0_i32_20 = arith.constant 0 : i32
    %24 = arith.addi %23, %c0_i32_20 : i32
    %c0_21 = arith.constant 0 : index
    %c2 = arith.constant 2 : index
    %25 = arith.index_cast %24 : i32 to index
    %c0_22 = arith.constant 0 : index
    %c0_23 = arith.constant 0 : index
    %26 = vector.load %arg2[%c0_21, %c2, %25, %c0_22, %c0_23] : memref<1x4x11x9x4xf32, #tpu.memory_space<vmem>>, vector<1x1x6x8x4xf32>
    %27 = vector.shape_cast %26 : vector<1x1x6x8x4xf32> to vector<6x8x4xf32>
    %28 = vector.shape_cast %27 : vector<6x8x4xf32> to vector<48x4xf32>
    %c0_24 = arith.constant 0 : index
    %c12 = arith.constant 12 : index
    %29 = vector.load %arg13[%c0_24, %c12] : memref<48x36xf32, #tpu.memory_space<vmem>>, vector<48x4xf32>
    tpu.vector_store %arg13[%c0_24, %c12], %28 {strides = array<i32>} : memref<48x36xf32, #tpu.memory_space<vmem>>, vector<48x4xf32>,
    %c4_i32_25 = arith.constant 4 : i32
    %30 = arith.muli %arg1, %c4_i32_25 : i32
    %c0_i32_26 = arith.constant 0 : i32
    %31 = arith.addi %30, %c0_i32_26 : i32
    %c0_27 = arith.constant 0 : index
    %c3 = arith.constant 3 : index
    %32 = arith.index_cast %31 : i32 to index
    %c0_28 = arith.constant 0 : index
    %c0_29 = arith.constant 0 : index
    %33 = vector.load %arg2[%c0_27, %c3, %32, %c0_28, %c0_29] : memref<1x4x11x9x4xf32, #tpu.memory_space<vmem>>, vector<1x1x6x8x4xf32>
    %34 = vector.shape_cast %33 : vector<1x1x6x8x4xf32> to vector<6x8x4xf32>
    %35 = vector.shape_cast %34 : vector<6x8x4xf32> to vector<48x4xf32>
    %c0_30 = arith.constant 0 : index
    %c16 = arith.constant 16 : index
    %36 = vector.load %arg13[%c0_30, %c16] : memref<48x36xf32, #tpu.memory_space<vmem>>, vector<48x4xf32>
    tpu.vector_store %arg13[%c0_30, %c16], %35 {strides = array<i32>} : memref<48x36xf32, #tpu.memory_space<vmem>>, vector<48x4xf32>,
    %c4_i32_31 = arith.constant 4 : i32
    %37 = arith.muli %arg1, %c4_i32_31 : i32
    %c0_i32_32 = arith.constant 0 : i32
    %38 = arith.addi %37, %c0_i32_32 : i32
    %c0_33 = arith.constant 0 : index
    %c2_34 = arith.constant 2 : index
    %39 = arith.index_cast %38 : i32 to index
    %c1_35 = arith.constant 1 : index
    %c0_36 = arith.constant 0 : index
    %40 = vector.load %arg2[%c0_33, %c2_34, %39, %c1_35, %c0_36] : memref<1x4x11x9x4xf32, #tpu.memory_space<vmem>>, vector<1x1x6x8x4xf32>
    %41 = vector.shape_cast %40 : vector<1x1x6x8x4xf32> to vector<6x8x4xf32>
    %42 = vector.shape_cast %41 : vector<6x8x4xf32> to vector<48x4xf32>
    %c0_37 = arith.constant 0 : index
    %c20 = arith.constant 20 : index
    %43 = vector.load %arg13[%c0_37, %c20] : memref<48x36xf32, #tpu.memory_space<vmem>>, vector<48x4xf32>
    tpu.vector_store %arg13[%c0_37, %c20], %42 {strides = array<i32>} : memref<48x36xf32, #tpu.memory_space<vmem>>, vector<48x4xf32>,
    %c4_i32_38 = arith.constant 4 : i32
    %44 = arith.muli %arg1, %c4_i32_38 : i32
    %c1_i32_39 = arith.constant 1 : i32
    %45 = arith.addi %44, %c1_i32_39 : i32
    %c0_40 = arith.constant 0 : index
    %c0_41 = arith.constant 0 : index
    %46 = arith.index_cast %45 : i32 to index
    %c0_42 = arith.constant 0 : index
    %c0_43 = arith.constant 0 : index
    %47 = vector.load %arg2[%c0_40, %c0_41, %46, %c0_42, %c0_43] : memref<1x4x11x9x4xf32, #tpu.memory_space<vmem>>, vector<1x1x6x8x4xf32>
    %48 = vector.shape_cast %47 : vector<1x1x6x8x4xf32> to vector<6x8x4xf32>
    %49 = vector.shape_cast %48 : vector<6x8x4xf32> to vector<48x4xf32>
    %c0_44 = arith.constant 0 : index
    %c24 = arith.constant 24 : index
    %50 = vector.load %arg13[%c0_44, %c24] : memref<48x36xf32, #tpu.memory_space<vmem>>, vector<48x4xf32>
    tpu.vector_store %arg13[%c0_44, %c24], %49 {strides = array<i32>} : memref<48x36xf32, #tpu.memory_space<vmem>>, vector<48x4xf32>,
    %c4_i32_45 = arith.constant 4 : i32
    %51 = arith.muli %arg1, %c4_i32_45 : i32
    %c1_i32_46 = arith.constant 1 : i32
    %52 = arith.addi %51, %c1_i32_46 : i32
    %c0_47 = arith.constant 0 : index
    %c1_48 = arith.constant 1 : index
    %53 = arith.index_cast %52 : i32 to index
    %c0_49 = arith.constant 0 : index
    %c0_50 = arith.constant 0 : index
    %54 = vector.load %arg2[%c0_47, %c1_48, %53, %c0_49, %c0_50] : memref<1x4x11x9x4xf32, #tpu.memory_space<vmem>>, vector<1x1x6x8x4xf32>
    %55 = vector.shape_cast %54 : vector<1x1x6x8x4xf32> to vector<6x8x4xf32>
    %56 = vector.shape_cast %55 : vector<6x8x4xf32> to vector<48x4xf32>
    %c0_51 = arith.constant 0 : index
    %c28 = arith.constant 28 : index
    %57 = vector.load %arg13[%c0_51, %c28] : memref<48x36xf32, #tpu.memory_space<vmem>>, vector<48x4xf32>
    tpu.vector_store %arg13[%c0_51, %c28], %56 {strides = array<i32>} : memref<48x36xf32, #tpu.memory_space<vmem>>, vector<48x4xf32>,
    %c4_i32_52 = arith.constant 4 : i32
    %58 = arith.muli %arg1, %c4_i32_52 : i32
    %c1_i32_53 = arith.constant 1 : i32
    %59 = arith.addi %58, %c1_i32_53 : i32
    %c0_54 = arith.constant 0 : index
    %c0_55 = arith.constant 0 : index
    %60 = arith.index_cast %59 : i32 to index
    %c1_56 = arith.constant 1 : index
    %c0_57 = arith.constant 0 : index
    %61 = vector.load %arg2[%c0_54, %c0_55, %60, %c1_56, %c0_57] : memref<1x4x11x9x4xf32, #tpu.memory_space<vmem>>, vector<1x1x6x8x4xf32>
    %62 = vector.shape_cast %61 : vector<1x1x6x8x4xf32> to vector<6x8x4xf32>
    %63 = vector.shape_cast %62 : vector<6x8x4xf32> to vector<48x4xf32>
    %c0_58 = arith.constant 0 : index
    %c32 = arith.constant 32 : index
    %64 = vector.load %arg13[%c0_58, %c32] : memref<48x36xf32, #tpu.memory_space<vmem>>, vector<48x4xf32>
    tpu.vector_store %arg13[%c0_58, %c32], %63 {strides = array<i32>} : memref<48x36xf32, #tpu.memory_space<vmem>>, vector<48x4xf32>,
    %c0_59 = arith.constant 0 : index
    %c0_60 = arith.constant 0 : index
    %65 = vector.load %arg13[%c0_59, %c0_60] : memref<48x36xf32, #tpu.memory_space<vmem>>, vector<48x36xf32>
    %c0_61 = arith.constant 0 : index
    %c0_62 = arith.constant 0 : index
    %66 = vector.load %arg3[%c0_61, %c0_62] : memref<36x8xf32, #tpu.memory_space<vmem>>, vector<36x8xf32>
    %cst = arith.constant dense<0.000000e+00> : vector<48x8xf32>
    %67 = tpu.matmul %65, %66, %cst {dimension_numbers = #tpu.dot_dimension_numbers<[1], [0], [0], [1], [0, 0, 1, 1], [], []>} : vector<48x36xf32>, vector<36x8xf32>, vector<48x8xf32> -> vector<48x8xf32>
    %c0_63 = arith.constant 0 : index
    %c0_64 = arith.constant 0 : index
    %68 = vector.load %arg4[%c0_63, %c0_64] : memref<1x8xf32, #tpu.memory_space<vmem>>, vector<1x8xf32>
    %69 = vector.broadcast %68 : vector<1x8xf32> to vector<48x8xf32>
    %70 = arith.mulf %67, %69 : vector<48x8xf32>
    %c0_65 = arith.constant 0 : index
    %c0_66 = arith.constant 0 : index
    %71 = vector.load %arg5[%c0_65, %c0_66] : memref<1x8xf32, #tpu.memory_space<vmem>>, vector<1x8xf32>
    %72 = vector.broadcast %71 : vector<1x8xf32> to vector<48x8xf32>
    %73 = arith.addf %70, %72 : vector<48x8xf32>
    %cst_67 = arith.constant 0.000000e+00 : f32
    %74 = vector.broadcast %cst_67 : f32 to vector<48x8xf32>
    %75 = arith.maximumf %73, %74 : vector<48x8xf32>
    %76 = vector.shape_cast %75 : vector<48x8xf32> to vector<6x8x8xf32>
    %77 = tpu.iota {dimensions = array<i32: 0>} : vector<6x1x1xi32>
    %78 = vector.broadcast %1 : i32 to vector<6x1x1xi32>
    %79 = arith.addi %78, %77 : vector<6x1x1xi32>
    %c0_i32_68 = arith.constant 0 : i32
    %80 = vector.broadcast %c0_i32_68 : i32 to vector<6x1x1xi32>
    %81 = arith.cmpi sge, %79, %80 : vector<6x1x1xi32>
    %c8_i32 = arith.constant 8 : i32
    %82 = vector.broadcast %c8_i32 : i32 to vector<6x1x1xi32>
    %83 = arith.cmpi slt, %79, %82 : vector<6x1x1xi32>
    %84 = arith.andi %81, %83 : vector<6x1x1xi1>
    %cst_69 = arith.constant 0.000000e+00 : f32
    %85 = vector.shape_cast %84 : vector<6x1x1xi1> to vector<6x1x1xi1>
    %86 = vector.broadcast %85 : vector<6x1x1xi1> to vector<6x8x8xi1>
    %87 = vector.broadcast %cst_69 : f32 to vector<6x8x8xf32>
    %88 = arith.select %86, %76, %87 : vector<6x8x8xi1>, vector<6x8x8xf32>
    %cst_70 = arith.constant 0.000000e+00 : f32
    %89 = vector.broadcast %cst_70 : f32 to vector<6x1x8xf32>
    %c0_71 = arith.constant 0 : index
    %c0_72 = arith.constant 0 : index
    %c0_73 = arith.constant 0 : index
    %90 = vector.load %arg14[%c0_71, %c0_72, %c0_73] : memref<6x10x8xf32, #tpu.memory_space<vmem>>, vector<6x1x8xf32>
    tpu.vector_store %arg14[%c0_71, %c0_72, %c0_73], %89 {strides = array<i32>} : memref<6x10x8xf32, #tpu.memory_space<vmem>>, vector<6x1x8xf32>,
    %c0_74 = arith.constant 0 : index
    %c9 = arith.constant 9 : index
    %c0_75 = arith.constant 0 : index
    %91 = vector.load %arg14[%c0_74, %c9, %c0_75] : memref<6x10x8xf32, #tpu.memory_space<vmem>>, vector<6x1x8xf32>
    tpu.vector_store %arg14[%c0_74, %c9, %c0_75], %89 {strides = array<i32>} : memref<6x10x8xf32, #tpu.memory_space<vmem>>, vector<6x1x8xf32>,
    %c0_76 = arith.constant 0 : index
    %c1_77 = arith.constant 1 : index
    %c0_78 = arith.constant 0 : index
    %92 = vector.load %arg14[%c0_76, %c1_77, %c0_78] : memref<6x10x8xf32, #tpu.memory_space<vmem>>, vector<6x8x8xf32>
    tpu.vector_store %arg14[%c0_76, %c1_77, %c0_78], %88 {strides = array<i32>} : memref<6x10x8xf32, #tpu.memory_space<vmem>>, vector<6x8x8xf32>,
    %c0_79 = arith.constant 0 : index
    %c0_80 = arith.constant 0 : index
    %c0_81 = arith.constant 0 : index
    %93 = vector.load %arg14[%c0_79, %c0_80, %c0_81] : memref<6x10x8xf32, #tpu.memory_space<vmem>>, vector<4x8x8xf32>
    %94 = vector.shape_cast %93 : vector<4x8x8xf32> to vector<32x8xf32>
    %c0_82 = arith.constant 0 : index
    %c0_83 = arith.constant 0 : index
    %95 = vector.load %arg15[%c0_82, %c0_83] : memref<32x72xf32, #tpu.memory_space<vmem>>, vector<32x8xf32>
    tpu.vector_store %arg15[%c0_82, %c0_83], %94 {strides = array<i32>} : memref<32x72xf32, #tpu.memory_space<vmem>>, vector<32x8xf32>,
    %c0_84 = arith.constant 0 : index
    %c1_85 = arith.constant 1 : index
    %c0_86 = arith.constant 0 : index
    %96 = vector.load %arg14[%c0_84, %c1_85, %c0_86] : memref<6x10x8xf32, #tpu.memory_space<vmem>>, vector<4x8x8xf32>
    %97 = vector.shape_cast %96 : vector<4x8x8xf32> to vector<32x8xf32>
    %c0_87 = arith.constant 0 : index
    %c8_88 = arith.constant 8 : index
    %98 = vector.load %arg15[%c0_87, %c8_88] : memref<32x72xf32, #tpu.memory_space<vmem>>, vector<32x8xf32>
    tpu.vector_store %arg15[%c0_87, %c8_88], %97 {strides = array<i32>} : memref<32x72xf32, #tpu.memory_space<vmem>>, vector<32x8xf32>,
    %c0_89 = arith.constant 0 : index
    %c2_90 = arith.constant 2 : index
    %c0_91 = arith.constant 0 : index
    %99 = vector.load %arg14[%c0_89, %c2_90, %c0_91] : memref<6x10x8xf32, #tpu.memory_space<vmem>>, vector<4x8x8xf32>
    %100 = vector.shape_cast %99 : vector<4x8x8xf32> to vector<32x8xf32>
    %c0_92 = arith.constant 0 : index
    %c16_93 = arith.constant 16 : index
    %101 = vector.load %arg15[%c0_92, %c16_93] : memref<32x72xf32, #tpu.memory_space<vmem>>, vector<32x8xf32>
    tpu.vector_store %arg15[%c0_92, %c16_93], %100 {strides = array<i32>} : memref<32x72xf32, #tpu.memory_space<vmem>>, vector<32x8xf32>,
    %c1_94 = arith.constant 1 : index
    %c0_95 = arith.constant 0 : index
    %c0_96 = arith.constant 0 : index
    %102 = vector.load %arg14[%c1_94, %c0_95, %c0_96] : memref<6x10x8xf32, #tpu.memory_space<vmem>>, vector<4x8x8xf32>
    %103 = vector.shape_cast %102 : vector<4x8x8xf32> to vector<32x8xf32>
    %c0_97 = arith.constant 0 : index
    %c24_98 = arith.constant 24 : index
    %104 = vector.load %arg15[%c0_97, %c24_98] : memref<32x72xf32, #tpu.memory_space<vmem>>, vector<32x8xf32>
    tpu.vector_store %arg15[%c0_97, %c24_98], %103 {strides = array<i32>} : memref<32x72xf32, #tpu.memory_space<vmem>>, vector<32x8xf32>,
    %c1_99 = arith.constant 1 : index
    %c1_100 = arith.constant 1 : index
    %c0_101 = arith.constant 0 : index
    %105 = vector.load %arg14[%c1_99, %c1_100, %c0_101] : memref<6x10x8xf32, #tpu.memory_space<vmem>>, vector<4x8x8xf32>
    %106 = vector.shape_cast %105 : vector<4x8x8xf32> to vector<32x8xf32>
    %c0_102 = arith.constant 0 : index
    %c32_103 = arith.constant 32 : index
    %107 = vector.load %arg15[%c0_102, %c32_103] : memref<32x72xf32, #tpu.memory_space<vmem>>, vector<32x8xf32>
    tpu.vector_store %arg15[%c0_102, %c32_103], %106 {strides = array<i32>} : memref<32x72xf32, #tpu.memory_space<vmem>>, vector<32x8xf32>,
    %c1_104 = arith.constant 1 : index
    %c2_105 = arith.constant 2 : index
    %c0_106 = arith.constant 0 : index
    %108 = vector.load %arg14[%c1_104, %c2_105, %c0_106] : memref<6x10x8xf32, #tpu.memory_space<vmem>>, vector<4x8x8xf32>
    %109 = vector.shape_cast %108 : vector<4x8x8xf32> to vector<32x8xf32>
    %c0_107 = arith.constant 0 : index
    %c40 = arith.constant 40 : index
    %110 = vector.load %arg15[%c0_107, %c40] : memref<32x72xf32, #tpu.memory_space<vmem>>, vector<32x8xf32>
    tpu.vector_store %arg15[%c0_107, %c40], %109 {strides = array<i32>} : memref<32x72xf32, #tpu.memory_space<vmem>>, vector<32x8xf32>,
    %c2_108 = arith.constant 2 : index
    %c0_109 = arith.constant 0 : index
    %c0_110 = arith.constant 0 : index
    %111 = vector.load %arg14[%c2_108, %c0_109, %c0_110] : memref<6x10x8xf32, #tpu.memory_space<vmem>>, vector<4x8x8xf32>
    %112 = vector.shape_cast %111 : vector<4x8x8xf32> to vector<32x8xf32>
    %c0_111 = arith.constant 0 : index
    %c48 = arith.constant 48 : index
    %113 = vector.load %arg15[%c0_111, %c48] : memref<32x72xf32, #tpu.memory_space<vmem>>, vector<32x8xf32>
    tpu.vector_store %arg15[%c0_111, %c48], %112 {strides = array<i32>} : memref<32x72xf32, #tpu.memory_space<vmem>>, vector<32x8xf32>,
    %c2_112 = arith.constant 2 : index
    %c1_113 = arith.constant 1 : index
    %c0_114 = arith.constant 0 : index
    %114 = vector.load %arg14[%c2_112, %c1_113, %c0_114] : memref<6x10x8xf32, #tpu.memory_space<vmem>>, vector<4x8x8xf32>
    %115 = vector.shape_cast %114 : vector<4x8x8xf32> to vector<32x8xf32>
    %c0_115 = arith.constant 0 : index
    %c56 = arith.constant 56 : index
    %116 = vector.load %arg15[%c0_115, %c56] : memref<32x72xf32, #tpu.memory_space<vmem>>, vector<32x8xf32>
    tpu.vector_store %arg15[%c0_115, %c56], %115 {strides = array<i32>} : memref<32x72xf32, #tpu.memory_space<vmem>>, vector<32x8xf32>,
    %c2_116 = arith.constant 2 : index
    %c2_117 = arith.constant 2 : index
    %c0_118 = arith.constant 0 : index
    %117 = vector.load %arg14[%c2_116, %c2_117, %c0_118] : memref<6x10x8xf32, #tpu.memory_space<vmem>>, vector<4x8x8xf32>
    %118 = vector.shape_cast %117 : vector<4x8x8xf32> to vector<32x8xf32>
    %c0_119 = arith.constant 0 : index
    %c64 = arith.constant 64 : index
    %119 = vector.load %arg15[%c0_119, %c64] : memref<32x72xf32, #tpu.memory_space<vmem>>, vector<32x8xf32>
    tpu.vector_store %arg15[%c0_119, %c64], %118 {strides = array<i32>} : memref<32x72xf32, #tpu.memory_space<vmem>>, vector<32x8xf32>,
    %c0_120 = arith.constant 0 : index
    %c0_121 = arith.constant 0 : index
    %120 = vector.load %arg15[%c0_120, %c0_121] : memref<32x72xf32, #tpu.memory_space<vmem>>, vector<32x72xf32>
    %c0_122 = arith.constant 0 : index
    %c0_123 = arith.constant 0 : index
    %121 = vector.load %arg6[%c0_122, %c0_123] : memref<72x8xf32, #tpu.memory_space<vmem>>, vector<72x8xf32>
    %cst_124 = arith.constant dense<0.000000e+00> : vector<32x8xf32>
    %122 = tpu.matmul %120, %121, %cst_124 {dimension_numbers = #tpu.dot_dimension_numbers<[1], [0], [0], [1], [0, 0, 1, 1], [], []>} : vector<32x72xf32>, vector<72x8xf32>, vector<32x8xf32> -> vector<32x8xf32>
    %c0_125 = arith.constant 0 : index
    %c0_126 = arith.constant 0 : index
    %123 = vector.load %arg7[%c0_125, %c0_126] : memref<1x8xf32, #tpu.memory_space<vmem>>, vector<1x8xf32>
    %124 = vector.broadcast %123 : vector<1x8xf32> to vector<32x8xf32>
    %125 = arith.mulf %122, %124 : vector<32x8xf32>
    %c0_127 = arith.constant 0 : index
    %c0_128 = arith.constant 0 : index
    %126 = vector.load %arg8[%c0_127, %c0_128] : memref<1x8xf32, #tpu.memory_space<vmem>>, vector<1x8xf32>
    %127 = vector.broadcast %126 : vector<1x8xf32> to vector<32x8xf32>
    %128 = arith.addf %125, %127 : vector<32x8xf32>
    %c4_i32_129 = arith.constant 4 : i32
    %129 = arith.muli %arg1, %c4_i32_129 : i32
    %c0_i32_130 = arith.constant 0 : i32
    %130 = arith.addi %129, %c0_i32_130 : i32
    %c1_i32_131 = arith.constant 1 : i32
    %131 = arith.addi %130, %c1_i32_131 : i32
    %c0_132 = arith.constant 0 : index
    %c3_133 = arith.constant 3 : index
    %132 = arith.index_cast %131 : i32 to index
    %c0_134 = arith.constant 0 : index
    %c0_135 = arith.constant 0 : index
    %133 = vector.load %arg2[%c0_132, %c3_133, %132, %c0_134, %c0_135] : memref<1x4x11x9x4xf32, #tpu.memory_space<vmem>>, vector<1x1x4x8x4xf32>
    %134 = vector.shape_cast %133 : vector<1x1x4x8x4xf32> to vector<4x8x4xf32>
    %135 = vector.shape_cast %134 : vector<4x8x4xf32> to vector<32x4xf32>
    %c0_136 = arith.constant 0 : index
    %c0_137 = arith.constant 0 : index
    %136 = vector.load %arg9[%c0_136, %c0_137] : memref<4x8xf32, #tpu.memory_space<vmem>>, vector<4x8xf32>
    %cst_138 = arith.constant dense<0.000000e+00> : vector<32x8xf32>
    %137 = tpu.matmul %135, %136, %cst_138 {dimension_numbers = #tpu.dot_dimension_numbers<[1], [0], [0], [1], [0, 0, 1, 1], [], []>} : vector<32x4xf32>, vector<4x8xf32>, vector<32x8xf32> -> vector<32x8xf32>
    %c0_139 = arith.constant 0 : index
    %c0_140 = arith.constant 0 : index
    %138 = vector.load %arg10[%c0_139, %c0_140] : memref<1x8xf32, #tpu.memory_space<vmem>>, vector<1x8xf32>
    %139 = vector.broadcast %138 : vector<1x8xf32> to vector<32x8xf32>
    %140 = arith.mulf %137, %139 : vector<32x8xf32>
    %c0_141 = arith.constant 0 : index
    %c0_142 = arith.constant 0 : index
    %141 = vector.load %arg11[%c0_141, %c0_142] : memref<1x8xf32, #tpu.memory_space<vmem>>, vector<1x8xf32>
    %142 = vector.broadcast %141 : vector<1x8xf32> to vector<32x8xf32>
    %143 = arith.addf %140, %142 : vector<32x8xf32>
    %144 = arith.addf %128, %143 : vector<32x8xf32>
    %cst_143 = arith.constant 0.000000e+00 : f32
    %145 = vector.broadcast %cst_143 : f32 to vector<32x8xf32>
    %146 = arith.maximumf %144, %145 : vector<32x8xf32>
    %c0_144 = arith.constant 0 : index
    %c0_145 = arith.constant 0 : index
    %c0_146 = arith.constant 0 : index
    %147 = vector.load %arg12[%c0_144, %c0_145, %c0_146] : memref<1x32x8xf32, #tpu.memory_space<vmem>>, vector<1x32x8xf32>
    %148 = vector.shape_cast %147 : vector<1x32x8xf32> to vector<32x8xf32>
    %149 = vector.shape_cast %146 : vector<32x8xf32> to vector<1x32x8xf32>
    tpu.vector_store %arg12[%c0_144, %c0_145, %c0_146], %149 {strides = array<i32>} : memref<1x32x8xf32, #tpu.memory_space<vmem>>, vector<1x32x8xf32>,
    return
  }
  func.func @transform_0(%arg0: i32, %arg1: i32) -> (i32, i32, i32, i32, i32) {
    %c0_i32 = arith.constant 0 : i32
    %c0_i32_0 = arith.constant 0 : i32
    %c0_i32_1 = arith.constant 0 : i32
    %c0_i32_2 = arith.constant 0 : i32
    %c0_i32_3 = arith.constant 0 : i32
    return %arg0, %c0_i32, %c0_i32_0, %c0_i32_1, %c0_i32_2 : i32, i32, i32, i32, i32
  }
  func.func @transform_1(%arg0: i32, %arg1: i32) -> (i32, i32) {
    %c0_i32 = arith.constant 0 : i32
    %c0_i32_0 = arith.constant 0 : i32
    %c0_i32_1 = arith.constant 0 : i32
    return %c0_i32, %c0_i32_0 : i32, i32
  }
  func.func @transform_2(%arg0: i32, %arg1: i32) -> (i32, i32) {
    %c0_i32 = arith.constant 0 : i32
    %c0_i32_0 = arith.constant 0 : i32
    %c0_i32_1 = arith.constant 0 : i32
    return %c0_i32, %c0_i32_0 : i32, i32
  }
  func.func @transform_3(%arg0: i32, %arg1: i32) -> (i32, i32) {
    %c0_i32 = arith.constant 0 : i32
    %c0_i32_0 = arith.constant 0 : i32
    %c0_i32_1 = arith.constant 0 : i32
    return %c0_i32, %c0_i32_0 : i32, i32
  }
  func.func @transform_4(%arg0: i32, %arg1: i32) -> (i32, i32) {
    %c0_i32 = arith.constant 0 : i32
    %c0_i32_0 = arith.constant 0 : i32
    %c0_i32_1 = arith.constant 0 : i32
    return %c0_i32, %c0_i32_0 : i32, i32
  }
  func.func @transform_5(%arg0: i32, %arg1: i32) -> (i32, i32) {
    %c0_i32 = arith.constant 0 : i32
    %c0_i32_0 = arith.constant 0 : i32
    %c0_i32_1 = arith.constant 0 : i32
    return %c0_i32, %c0_i32_0 : i32, i32
  }
  func.func @transform_6(%arg0: i32, %arg1: i32) -> (i32, i32) {
    %c0_i32 = arith.constant 0 : i32
    %c0_i32_0 = arith.constant 0 : i32
    %c0_i32_1 = arith.constant 0 : i32
    return %c0_i32, %c0_i32_0 : i32, i32
  }
  func.func @transform_7(%arg0: i32, %arg1: i32) -> (i32, i32) {
    %c0_i32 = arith.constant 0 : i32
    %c0_i32_0 = arith.constant 0 : i32
    %c0_i32_1 = arith.constant 0 : i32
    return %c0_i32, %c0_i32_0 : i32, i32
  }
  func.func @transform_8(%arg0: i32, %arg1: i32) -> (i32, i32) {
    %c0_i32 = arith.constant 0 : i32
    %c0_i32_0 = arith.constant 0 : i32
    %c0_i32_1 = arith.constant 0 : i32
    return %c0_i32, %c0_i32_0 : i32, i32
  }
  func.func @transform_9(%arg0: i32, %arg1: i32) -> (i32, i32) {
    %c0_i32 = arith.constant 0 : i32
    %c0_i32_0 = arith.constant 0 : i32
    %c0_i32_1 = arith.constant 0 : i32
    return %c0_i32, %c0_i32_0 : i32, i32
  }
  func.func @transform_10(%arg0: i32, %arg1: i32) -> (i32, i32, i32) {
    %c0_i32 = arith.constant 0 : i32
    %c0_i32_0 = arith.constant 0 : i32
    return %arg0, %arg1, %c0_i32 : i32, i32, i32
  }
}

</mosaic_0001>

<bundles_post_ra>
// kernel: _lambda_.1
= control target key start
LH: loop header
LB: loop body
LE: loop exit
PB: predicated region body
PF: predicated region fallthrough
CT: control target
= control target key end

     0   :  { %s3451_s0 = inlined_call_operand.hbm [shape: f32[2,4,11,9,4], index: 0, kind: input, shape index: {}]   ;;  %s3452_s1 = inlined_call_operand.hbm [shape: f32[36,8], index: 1, kind: input, shape index: {}]   ;;  %s3453_s2 = inlined_call_operand.hbm [shape: f32[1,8], index: 2, kind: input, shape index: {}]   ;;  %s3454_s3 = inlined_call_operand.hbm [shape: f32[1,8], index: 3, kind: input, shape index: {}]   ;;  %s3455_s4 = inlined_call_operand.hbm [shape: f32[72,8], index: 4, kind: input, shape index: {}]   ;;  %s3456_s5 = inlined_call_operand.hbm [shape: f32[1,8], index: 5, kind: input, shape index: {}]   ;;  %s3457_s6 = inlined_call_operand.hbm [shape: f32[1,8], index: 6, kind: input, shape index: {}]   ;;  %s3458_s7 = inlined_call_operand.hbm [shape: f32[4,8], index: 7, kind: input, shape index: {}]   ;;  %s3459_s8 = inlined_call_operand.hbm [shape: f32[1,8], index: 8, kind: input, shape index: {}]   ;;  %s3460_s9 = inlined_call_operand.hbm [shape: f32[1,8], index: 9, kind: input, shape index: {}]   ;;  %s3461_s10 = inlined_call_operand.hbm [shape: f32[2,64,8], index: 10, kind: output, shape index: {}]  }
   0x1   :  { %3479 = sst [smem:[#allocation37_spill]] %s3451_s0 }
   0x2   :  { %3480 = sst [smem:[#allocation38_spill]] %s3452_s1 }
   0x3   :  { %3481 = sst [smem:[#allocation39_spill]] %s3453_s2 }
   0x4   :  { %3482 = sst [smem:[#allocation40_spill]] %s3454_s3 }
   0x5   :  { %3483 = sst [smem:[#allocation41_spill]] %s3455_s4 }
   0x6   :  { %3484 = sst [smem:[#allocation42_spill]] %s3456_s5 }
   0x7   :  { %3485 = sst [smem:[#allocation43_spill]] %s3461_s10 }
   0x8   :  { %15 = vsyncpa [#allocation6], 0 }
   0x9   :  { %17 = vsyncpa [#allocation6 + $0x1], 0 }
   0xa   :  { %18 = vsyncpa [#allocation9], 0 }
   0xb   :  { %19 = vsyncpa [#allocation12], 0 }
   0xc   :  { %20 = vsyncpa [#allocation15], 0 }
   0xd   :  { %21 = vsyncpa [#allocation18], 0 }
   0xe   :  { %22 = vsyncpa [#allocation21], 0 }
   0xf   :  { %23 = vsyncpa [#allocation7], 0 }
  0x10   :  { %25 = vsyncpa [#allocation7 + $0x1], 0  ;;  %s2692_s13 = smov 0   ;;  %s2694_s14 = smov 0  }
  0x11   :  { %s2696_s15 = smov 0   ;;  %s2698_s16 = smov 0  }
  0x12   :  { %s2700_s17 = smov 0   ;;  %s2702_s18 = smov 0  }
  0x13   :  { %s2704_s19 = smov 0   ;;  %s2706_s20 = smov 0  }
  0x14   :  { %s2708_s21 = smov 0   ;;  %s2710_s22 = smov 0  }
  0x15   :  { %s2712_s23 = smov 0  }
  0x16 LB: > { %3486 = sst [smem:[#allocation30_spill]] %s2568_s13  ;;  %s3462_s24 = sadd.s32 4294967295, %s2608_s23   ;;  %s2608_s23 = sphi %s2712_s23, %s31_s23   ;;  %s2604_s22 = sphi %s2710_s22, %s3538_s22   ;;  %s2600_s21 = sphi %s2708_s21, %s3537_s21   ;;  %s2596_s20 = sphi %s2706_s20, %s3536_s20   ;;  %s2592_s19 = sphi %s2704_s19, %s3535_s19   ;;  %s2588_s18 = sphi %s2702_s18, %s3534_s18   ;;  %s2584_s17 = sphi %s2700_s17, %s3533_s17   ;;  %s2580_s16 = sphi %s2698_s16, %s3532_s16   ;;  %s2576_s15 = sphi %s2696_s15, %s3531_s15   ;;  %s2572_s14 = sphi %s2694_s14, %s3528_s14   ;;  %s2568_s13 = sphi %s2692_s13, %s3530_s13  }
  0x17   : > { %3487 = sst [smem:[#allocation31_spill]] %s2572_s14  ;;  %p1755_p0 = scmp.ge.s32.totalorder %s2608_s23, 1 }
  0x18   : > { %3488 = sst [smem:[#allocation32_spill]] %s2576_s15  ;;  %p2751_p1 = scmp.eq.s32.totalorder %s3462_s24, 0 }
  0x19   : > { %3489 = sst [smem:[#allocation33_spill]] %s2592_s19  ;;  %p291_p2 = scmp.lt.s32.totalorder %s2608_s23, 5 }
  0x1a   : > { %3490 = sst [smem:[#allocation34_spill]] %s2596_s20  ;;  %s2610_s27 = smov [#allocation8]  }
  0x1b   : > { %s3491_s25 = scalar_select %p2751_p1, 1, 0 }
  0x1c   : > { %p2756_p3 = pnand %p1755_p0, %p291_p2  ;;  %s303_s28 = sshll.u32 %s2610_s27, 4  ;;  %s2760_s28 = int_to_ptr.vmem [resolvable:$true] %s303_s28 }
  0x1d   : > { %3492 = sst [smem:[#allocation35_spill]] %s3491_s25  ;;  %s2611_s30 = smov [#allocation11]  }
  0x1e   : > { %s3493_s26 = scalar_select %p2756_p3, 1, 0 }
  0x1f   : > { %p2015_p4 = pneg %p2756_p3  ;;  %s328_s11 = sshll.u32 %s2611_s30, 4  ;;  %s2770_s11 = int_to_ptr.vmem [resolvable:$true] %s328_s11 }
  0x20   : > { %3494 = sst [smem:[#allocation36_spill]] %s3493_s26  ;;  %s2612_s12 = smov [#allocation14]  }
  0x21   : > { %p2766_p5 = pnand %p2015_p4, %p2751_p1  ;;  %s2772_s24 = sshll.u32 %s2612_s12, 4  ;;  %s353_s24 = int_to_ptr.vmem [resolvable:$true] %s2772_s24 }
  0x22   : > { %s3496_s1 = sld [smem:[#allocation38_spill]] }
  0x23   : > { %p2782_p7 = pneg %p2766_p5 }
  0x28   : > { %s2184_s27 = scalar_lea.hbm %s3496_s1, 640 }
  0x29   : > { %p2185_p6 = scmp.ne.s32.totalorder %s3496_s1, %s2184_s27  ;;  %p2191_p10 = scmp.lt.u32.totalorder %s2184_s27, %s3496_s1 }
  0x2b   : > { %p2187_p8 = pnand %p2782_p7, %p2185_p6 }
  0x2d   : > { %p2188_p9 = pneg %p2187_p8 }
  0x2f   : > { %p2193_p11 = pnand %p2191_p10, %p2188_p9 }
  0x31   : > { %2196 = shalt.err (!%p2193_p11)
}
  0x32   : > { %s2197_s10 = scalar_lea.vmem %s2760_s28, 640  ;;  %p2205_p2 = scmp.lt.s32.totalorder %s2760_s28, %s2760_s28 }
  0x33   : > { %p2198_p12 = scmp.ne.s32.totalorder %s2760_s28, %s2197_s10  ;;  %p2206_p4 = scmp.lt.s32.totalorder %s2197_s10, %s2197_s10 }
  0x35   : > { %p2200_p13 = pnand %p2198_p12, %p2782_p7  ;;  %p2207_p6 = por %p2206_p4, %p2205_p2 }
  0x37   : > { %p2201_p0 = pneg %p2200_p13 }
  0x39   : > { %p2208_p8 = pnand %p2207_p6, %p2201_p0 }
  0x3b   : > { %2211 = shalt.err (!%p2208_p8)
}
  0x3c   : > { %s3475_s19 = smov 128   ;;  %s3477_s20 = smov 8  }
  0x3d   : > { %2018 = dma.hbm_to_vmem [thread:$0]  (!%p2766_p5), %s3496_s1, 640, %s2760_s28, [#allocation9], %s3475_s19, %s3475_s19, %s3477_s20  }
  0x3e   : > { %s3498_s3 = sld [smem:[#allocation40_spill]] }
  0x44   : > { %s2212_s10 = scalar_lea.hbm %s3498_s3, 16 }
  0x45   : > { %p2213_p9 = scmp.ne.s32.totalorder %s3498_s3, %s2212_s10  ;;  %p2219_p12 = scmp.lt.u32.totalorder %s2212_s10, %s3498_s3 }
  0x47   : > { %p2215_p10 = pnand %p2213_p9, %p2782_p7 }
  0x49   : > { %p2216_p11 = pneg %p2215_p10 }
  0x4b   : > { %p2221_p13 = pnand %p2219_p12, %p2216_p11 }
  0x4d   : > { %2224 = shalt.err (!%p2221_p13)
}
  0x4e   : > { %s2225_s28 = scalar_lea.vmem %s2770_s11, 16  ;;  %s2232_s13 = scalar_lea.vmem %s2770_s11, 32 }
  0x4f   : > { %p2226_p0 = scmp.ne.s32.totalorder %s2770_s11, %s2225_s28  ;;  %p2233_p6 = scmp.lt.s32.totalorder %s2770_s11, %s2770_s11 }
  0x50   : > { %p2234_p8 = scmp.lt.s32.totalorder %s2232_s13, %s2225_s28 }
  0x51   : > { %p2228_p2 = pnand %p2226_p0, %p2782_p7 }
  0x52   : > { %p2235_p9 = por %p2234_p8, %p2233_p6 }
  0x53   : > { %p2229_p4 = pneg %p2228_p2 }
  0x55   : > { %p2236_p10 = pnand %p2235_p9, %p2229_p4 }
  0x57   : > { %2239 = shalt.err (!%p2236_p10)
}
  0x58   : > { %2024 = dma.hbm_to_vmem [thread:$0]  (!%p2766_p5), %s3498_s3, 16, %s2770_s11, [#allocation12]  }
  0x59   : > { %s3499_s5 = sld [smem:[#allocation42_spill]] }
  0x5f   : > { %s2240_s27 = scalar_lea.hbm %s3499_s5, 16 }
  0x60   : > { %p2241_p11 = scmp.ne.s32.totalorder %s3499_s5, %s2240_s27  ;;  %p2247_p0 = scmp.lt.u32.totalorder %s2240_s27, %s3499_s5 }
  0x62   : > { %p2243_p12 = pnand %p2241_p11, %p2782_p7 }
  0x64   : > { %p2244_p13 = pneg %p2243_p12 }
  0x66   : > { %p2249_p2 = pnand %p2247_p0, %p2244_p13 }
  0x68   : > { %2252 = shalt.err (!%p2249_p2)
}
  0x69   : > { %s2253_s13 = scalar_lea.vmem %s353_s24, 16  ;;  %s2260_s11 = scalar_lea.vmem %s353_s24, 32 }
  0x6a   : > { %p2254_p4 = scmp.ne.s32.totalorder %s353_s24, %s2253_s13  ;;  %p2261_p9 = scmp.lt.s32.totalorder %s353_s24, %s353_s24 }
  0x6b   : > { %p2262_p10 = scmp.lt.s32.totalorder %s2260_s11, %s2253_s13 }
  0x6c   : > { %p2256_p6 = pnand %p2254_p4, %p2782_p7 }
  0x6d   : > { %p2263_p3 = por %p2262_p10, %p2261_p9 }
  0x6e   : > { %p2257_p8 = pneg %p2256_p6 }
  0x70   : > { %p2264_p1 = pnand %p2263_p3, %p2257_p8 }
  0x72   : > { %2267 = shalt.err (!%p2264_p1)
}
  0x73   : > { %2030 = dma.hbm_to_vmem [thread:$0]  (!%p2766_p5), %s3499_s5, 16, %s353_s24, [#allocation15]  }
  0x74   : > { %s2615_s25 = smov [#allocation17]   ;;  %s2616_s27 = smov [#allocation10]  }
  0x75   : > { %s374_s26 = sshll.u32 %s2615_s25, 4  ;;  %s317_s30 = sshll.u32 %s2616_s27, 4  ;;  %s375_s26 = int_to_ptr.vmem [resolvable:$true] %s374_s26  ;;  %s318_s30 = int_to_ptr.vmem [resolvable:$true] %s317_s30 }
  0x76   : > { %s2268_s28 = scalar_lea.hbm %s3458_s7, 64 }
  0x77   : > { %p2269_p1 = scmp.ne.s32.totalorder %s3458_s7, %s2268_s28  ;;  %p2275_p12 = scmp.lt.u32.totalorder %s2268_s28, %s3458_s7 }
  0x79   : > { %p2271_p3 = pnand %p2269_p1, %p2782_p7 }
  0x7b   : > { %p2272_p11 = pneg %p2271_p3 }
  0x7d   : > { %p2277_p13 = pnand %p2275_p12, %p2272_p11 }
  0x7f   : > { %2280 = shalt.err (!%p2277_p13)
}
  0x80   : > { %s2281_s24 = scalar_lea.vmem %s375_s26, 64  ;;  %p2289_p6 = scmp.lt.s32.totalorder %s375_s26, %s375_s26 }
  0x81   : > { %p2282_p0 = scmp.ne.s32.totalorder %s375_s26, %s2281_s24  ;;  %p2290_p8 = scmp.lt.s32.totalorder %s2281_s24, %s2281_s24 }
  0x83   : > { %p2284_p2 = pnand %p2282_p0, %p2782_p7  ;;  %p2291_p9 = por %p2290_p8, %p2289_p6 }
  0x85   : > { %p2285_p4 = pneg %p2284_p2 }
  0x87   : > { %p2292_p10 = pnand %p2291_p9, %p2285_p4 }
  0x89   : > { %2295 = shalt.err (!%p2292_p10)
}
  0x8a   : > { %2036 = dma.hbm_to_vmem [thread:$0]  (!%p2766_p5), %s3458_s7, 64, %s375_s26, [#allocation18]  }
  0x8b   : > { %s3500_s2 = sld [smem:[#allocation39_spill]] }
  0x91   : > { %s2296_s12 = scalar_lea.hbm %s3500_s2, 16 }
  0x92   : > { %p2297_p1 = scmp.ne.s32.totalorder %s3500_s2, %s2296_s12  ;;  %p2303_p12 = scmp.lt.u32.totalorder %s2296_s12, %s3500_s2 }
  0x94   : > { %p2299_p3 = pnand %p2297_p1, %p2782_p7 }
  0x96   : > { %p2300_p11 = pneg %p2299_p3 }
  0x98   : > { %p2305_p13 = pnand %p2303_p12, %p2300_p11 }
  0x9a   : > { %2308 = shalt.err (!%p2305_p13)
}
  0x9b   : > { %s2309_s14 = scalar_lea.vmem %s318_s30, 16  ;;  %s2316_s26 = scalar_lea.vmem %s318_s30, 32 }
  0x9c   : > { %p2310_p0 = scmp.ne.s32.totalorder %s318_s30, %s2309_s14  ;;  %p2317_p6 = scmp.lt.s32.totalorder %s318_s30, %s318_s30 }
  0x9d   : > { %p2318_p8 = scmp.lt.s32.totalorder %s2316_s26, %s2309_s14 }
  0x9e   : > { %p2312_p2 = pnand %p2310_p0, %p2782_p7 }
  0x9f   : > { %p2319_p9 = por %p2318_p8, %p2317_p6 }
  0xa0   : > { %p2313_p4 = pneg %p2312_p2 }
  0xa2   : > { %p2320_p10 = pnand %p2319_p9, %p2313_p4 }
  0xa4   : > { %2323 = shalt.err (!%p2320_p10)
}
  0xa5   : > { %2021 = dma.hbm_to_vmem [thread:$0]  (!%p2766_p5), %s3500_s2, 16, %s318_s30, [#allocation9]  }
  0xa6   : > { %s2617_s25 = smov [#allocation13]   ;;  %s2618_s27 = smov [#allocation16]  }
  0xa7   : > { %s338_s19 = sshll.u32 %s2617_s25, 4  ;;  %s363_s12 = sshll.u32 %s2618_s27, 4  ;;  %s339_s19 = int_to_ptr.vmem [resolvable:$true] %s338_s19  ;;  %s364_s12 = int_to_ptr.vmem [resolvable:$true] %s363_s12 }
  0xa8   : > { %s3501_s4 = sld [smem:[#allocation41_spill]] }
  0xae   : > { %s2324_s13 = scalar_lea.hbm %s3501_s4, 1152 }
  0xaf   : > { %p2325_p1 = scmp.ne.s32.totalorder %s3501_s4, %s2324_s13  ;;  %p2331_p12 = scmp.lt.u32.totalorder %s2324_s13, %s3501_s4 }
  0xb1   : > { %p2327_p3 = pnand %p2325_p1, %p2782_p7 }
  0xb3   : > { %p2328_p11 = pneg %p2327_p3 }
  0xb5   : > { %p2333_p13 = pnand %p2331_p12, %p2328_p11 }
  0xb7   : > { %2336 = shalt.err (!%p2333_p13)
}
  0xb8   : > { %s2337_s30 = scalar_lea.vmem %s339_s19, 1152  ;;  %p2345_p6 = scmp.lt.s32.totalorder %s339_s19, %s339_s19 }
  0xb9   : > { %p2338_p0 = scmp.ne.s32.totalorder %s339_s19, %s2337_s30  ;;  %p2346_p8 = scmp.lt.s32.totalorder %s2337_s30, %s2337_s30 }
  0xbb   : > { %p2340_p2 = pnand %p2338_p0, %p2782_p7  ;;  %p2347_p9 = por %p2346_p8, %p2345_p6 }
  0xbd   : > { %p2341_p4 = pneg %p2340_p2 }
  0xbf   : > { %p2348_p10 = pnand %p2347_p9, %p2341_p4 }
  0xc1   : > { %2351 = shalt.err (!%p2348_p10)
}
  0xc2   : > { %s3502_s15 = smov 128   ;;  %s2352_s13 = scalar_lea.hbm %s3457_s6, 16 }
  0xc3   : > { %2027 = dma.hbm_to_vmem [thread:$0]  (!%p2766_p5), %s3501_s4, 1152, %s339_s19, [#allocation12], %s3502_s15, %s3502_s15, %s3477_s20  }
  0xc4   : > { %p2353_p1 = scmp.ne.s32.totalorder %s3457_s6, %s2352_s13  ;;  %p2359_p12 = scmp.lt.u32.totalorder %s2352_s13, %s3457_s6 }
  0xc6   : > { %p2355_p3 = pnand %p2353_p1, %p2782_p7 }
  0xc8   : > { %p2356_p11 = pneg %p2355_p3 }
  0xca   : > { %p2361_p13 = pnand %p2359_p12, %p2356_p11 }
  0xcc   : > { %2364 = shalt.err (!%p2361_p13)
}
  0xcd   : > { %s2365_s30 = scalar_lea.vmem %s364_s12, 16  ;;  %s2372_s19 = scalar_lea.vmem %s364_s12, 32 }
  0xce   : > { %p2366_p0 = scmp.ne.s32.totalorder %s364_s12, %s2365_s30  ;;  %p2373_p6 = scmp.lt.s32.totalorder %s364_s12, %s364_s12 }
  0xcf   : > { %p2374_p8 = scmp.lt.s32.totalorder %s2372_s19, %s2365_s30 }
  0xd0   : > { %p2368_p2 = pnand %p2366_p0, %p2782_p7 }
  0xd1   : > { %p2375_p9 = por %p2374_p8, %p2373_p6 }
  0xd2   : > { %p2369_p4 = pneg %p2368_p2 }
  0xd4   : > { %p2376_p10 = pnand %p2375_p9, %p2369_p4 }
  0xd6   : > { %2379 = shalt.err (!%p2376_p10)
}
  0xd7   : > { %2033 = dma.hbm_to_vmem [thread:$0]  (!%p2766_p5), %s3457_s6, 16, %s364_s12, [#allocation15]  }
  0xd8   : > { %s2619_s10 = smov [#allocation19]   ;;  %s2620_s13 = smov [#allocation20]  }
  0xd9   : > { %s385_s28 = sshll.u32 %s2619_s10, 4  ;;  %s396_s11 = sshll.u32 %s2620_s13, 4  ;;  %s386_s28 = int_to_ptr.vmem [resolvable:$true] %s385_s28  ;;  %s397_s11 = int_to_ptr.vmem [resolvable:$true] %s396_s11 }
  0xda   : > { %s2380_s24 = scalar_lea.hbm %s3459_s8, 16 }
  0xdb   : > { %p2381_p1 = scmp.ne.s32.totalorder %s3459_s8, %s2380_s24  ;;  %p2387_p12 = scmp.lt.u32.totalorder %s2380_s24, %s3459_s8 }
  0xdd   : > { %p2383_p3 = pnand %p2381_p1, %p2782_p7 }
  0xdf   : > { %p2384_p11 = pneg %p2383_p3 }
  0xe1   : > { %p2389_p13 = pnand %p2387_p12, %p2384_p11 }
  0xe3   : > { %2392 = shalt.err (!%p2389_p13)
}
  0xe4   : > { %s2393_s12 = scalar_lea.vmem %s386_s28, 16  ;;  %s2400_s27 = scalar_lea.vmem %s386_s28, 32 }
  0xe5   : > { %p2394_p0 = scmp.ne.s32.totalorder %s386_s28, %s2393_s12  ;;  %p2401_p6 = scmp.lt.s32.totalorder %s386_s28, %s386_s28 }
  0xe6   : > { %p2402_p8 = scmp.lt.s32.totalorder %s2400_s27, %s2393_s12 }
  0xe7   : > { %p2396_p2 = pnand %p2394_p0, %p2782_p7 }
  0xe8   : > { %p2403_p9 = por %p2402_p8, %p2401_p6 }
  0xe9   : > { %p2397_p4 = pneg %p2396_p2 }
  0xeb   : > { %p2404_p10 = pnand %p2403_p9, %p2397_p4 }
  0xed   : > { %2407 = shalt.err (!%p2404_p10)
}
  0xee   : > { %2039 = dma.hbm_to_vmem [thread:$0]  (!%p2766_p5), %s3459_s8, 16, %s386_s28, [#allocation18]  }
  0xef   : > { %s2408_s26 = scalar_lea.hbm %s3460_s9, 16 }
  0xf0   : > { %p2409_p1 = scmp.ne.s32.totalorder %s3460_s9, %s2408_s26  ;;  %p2415_p12 = scmp.lt.u32.totalorder %s2408_s26, %s3460_s9 }
  0xf2   : > { %p2411_p3 = pnand %p2409_p1, %p2782_p7 }
  0xf4   : > { %p2412_p11 = pneg %p2411_p3 }
  0xf6   : > { %p2417_p13 = pnand %p2415_p12, %p2412_p11 }
  0xf8   : > { %2420 = shalt.err (!%p2417_p13)
}
  0xf9   : > { %s2421_s12 = scalar_lea.vmem %s397_s11, 16  ;;  %s2428_s28 = scalar_lea.vmem %s397_s11, 32 }
  0xfa   : > { %p2422_p0 = scmp.ne.s32.totalorder %s397_s11, %s2421_s12  ;;  %p2429_p6 = scmp.lt.s32.totalorder %s397_s11, %s397_s11 }
  0xfb   : > { %p2430_p8 = scmp.lt.s32.totalorder %s2428_s28, %s2421_s12 }
  0xfc   : > { %p2424_p2 = pnand %p2422_p0, %p2782_p7 }
  0xfd   : > { %p2431_p9 = por %p2430_p8, %p2429_p6 }
  0xfe   : > { %p2425_p4 = pneg %p2424_p2 }
 0x100   : > { %p2432_p10 = pnand %p2431_p9, %p2425_p4 }
 0x102   : > { %2435 = shalt.err (!%p2432_p10)
}
 0x103   : > { %s3503_s0 = sld [smem:[#allocation35_spill]]  ;;  %s3504_s13 = sld [smem:[#allocation32_spill]] }
 0x104   : > { %2042 = dma.hbm_to_vmem [thread:$0]  (!%p2766_p5), %s3460_s9, 16, %s397_s11, [#allocation21]  }
 0x105   : > { %s1754_s20 = sadd.s32 4294967294, %s2608_s23   ;;  %s3505_s14 = sld [smem:[#allocation31_spill]] }
 0x106   : > { %s40_s29 = sadd.s32 1, %s2600_s21  ;;  %s43_s26 = sadd.s32 1, %s2604_s22 }
 0x107   : > { %p41_p7 = scmp.ge.s32.totalorder %s40_s29, 2  ;;  %s3506_s24 = sld [smem:[#allocation30_spill]] }
 0x108   : > { %s50_s30 = sadd.s32 1, %s2588_s18  ;;  %p57_p1 = scmp.ne.s32.totalorder %s2588_s18, %s2584_s17 }
 0x109   : > { %p58_p3 = scmp.eq.s32.totalorder %s2608_s23, 0  ;;  %s3540_s29 = smov (%p41_p7, %s40_s29), 0 }
 0x10a   : > { %s3542_s26 = smov (!%p41_p7, %s43_s26), %s2604_s22  ;;  %p63_p5 = scmp.ne.s32.totalorder %s2584_s17, %s2580_s16 }
 0x10b   : > { %p2970_p11 = por %p58_p3, %p57_p1  ;;  %p45_p12 = scmp.ge.s32.totalorder %s3542_s26, 2 }
 0x10c   : > { %s263_s19 = ssub.s32 %s2600_s21, %s3540_s29  ;;  %p3508_p13 = scmp.ne.s32.totalorder %s3503_s0, 0 }
 0x10d   : > { %s267_s12 = sadd.s32 1, %s3504_s13  ;;  %s3544_s26 = smov (%p45_p12, %s3542_s26), 0 }
 0x10e   : > { %p2980_p0 = por %p3508_p13, %p63_p5  ;;  %p277_p2 = scmp.ne.s32.totalorder %s3504_s13, %s3505_s14 }
 0x10f   : > { %s3510_s28 = sadd.s32 4294967295, %s2608_s23   ;;  %s47_s27 = ssub.s32 %s2604_s22, %s3544_s26 }
 0x110   : > { %p278_p4 = scmp.eq.s32.totalorder %s3510_s28, 3  ;;  %p283_p6 = scmp.ne.s32.totalorder %s3505_s14, %s3506_s24 }
 0x111   : > { %p48_p8 = scmp.eq.s32.totalorder %s47_s27, 0  ;;  %s264_s16 = sor.u32 %s263_s19, %s47_s27 }
 0x112   : > { %p265_p9 = scmp.eq.s32.totalorder %s264_s16, 0  ;;  %p2995_p10 = por %p278_p4, %p277_p2 }
 0x113   : > { %s3000_s0 = scalar_select %p48_p8, %s2588_s18, %s50_s30  }
 0x114   : > { %s3511_s10 = scalar_select %p2995_p10, 1, 0 }
 0x115   : > { %s3546_s13 = smov (!%p265_p9, %s3504_s13), %s267_s12  ;;  %p284_p7 = scmp.eq.s32.totalorder %s1754_s20, 3 }
 0x116   : > { %p2060_p1 = scmp.lt.s32.totalorder %s2608_s23, 4  ;;  %s407_s1 = sand.u32 1, %s2588_s18  }
 0x117   : > { %s1973_s2 = smul.u32 11264, %s2604_s22  ;;  %p3008_p3 = por %p284_p7, %p283_p6 }
 0x118   : > { %s1972_s14 = smul.u32 704, %s407_s1  ;;  %p3014_p5 = pnand %p2060_p1, %p2970_p11 }
 0x119   : > { %s3512_s3 = scalar_select %p3008_p3, 1, 0 }
 0x11a   : > { %s3514_s30 = sld [smem:[#allocation37_spill]]  ;;  %s411_s20 = scalar_lea.vmem [#allocation5], %s1972_s14 }
 0x11b   : > { %s418_s27 = sshll.u32 %s411_s20, 4  ;;  %s3025_s11 = scalar_lea.sflag [#allocation6], %s407_s1  ;;  %s3023_s27 = int_to_ptr.vmem [resolvable:$true] %s418_s27 }
 0x11c   : > { %p2438_p12 = pneg %p3014_p5 }
 0x120   : > { %s3021_s12 = scalar_lea.hbm %s3514_s30, %s1973_s2  ;;  %s2441_s28 = scalar_lea.hbm %s3514_s30, 22528 }
 0x121   : > { %s2436_s16 = scalar_lea.hbm %s3021_s12, 11264  ;;  %p2442_p4 = scmp.lt.u32.totalorder %s3021_s12, %s3514_s30 }
 0x122   : > { %p2437_p11 = scmp.ne.s32.totalorder %s3021_s12, %s2436_s16  ;;  %p2443_p6 = scmp.lt.u32.totalorder %s2441_s28, %s2436_s16 }
 0x123   : > { %p2445_p9 = scmp.lt.u32.totalorder %s2436_s16, %s3021_s12 }
 0x124   : > { %p2439_p13 = pnand %p2438_p12, %p2437_p11  ;;  %p2444_p8 = por %p2443_p6, %p2442_p4 }
 0x126   : > { %p2440_p2 = pneg %p2439_p13  ;;  %p2446_p7 = por %p2445_p9, %p2444_p8 }
 0x128   : > { %p2447_p1 = pnand %p2446_p7, %p2440_p2 }
 0x12a   : > { %2450 = shalt.err (!%p2447_p1)
}
 0x12b   : > { %s2451_s1 = scalar_lea.vmem %s3023_s27, 11264  ;;  %s2621_s14 = smov [#allocation5]  }
 0x12c   : > { %p2452_p11 = scmp.ne.s32.totalorder %s3023_s27, %s2451_s1  ;;  %s2456_s20 = sshll.u32 %s2621_s14, 4  ;;  %s2457_s20 = int_to_ptr.vmem [resolvable:$false] %s2456_s20 }
 0x12d   : > { %s2458_s4 = scalar_lea.vmem %s2457_s20, 22528  ;;  %p2459_p10 = scmp.lt.s32.totalorder %s3023_s27, %s2457_s20 }
 0x12e   : > { %p2454_p13 = pnand %p2452_p11, %p2438_p12  ;;  %p2460_p4 = scmp.lt.s32.totalorder %s2458_s4, %s2451_s1 }
 0x130   : > { %p2455_p3 = pneg %p2454_p13  ;;  %p2461_p6 = por %p2460_p4, %p2459_p10 }
 0x132   : > { %p2462_p8 = pnand %p2461_p6, %p2455_p3 }
 0x134   : > { %2465 = shalt.err (!%p2462_p8)
}
 0x135   : > { %s3515_s5 = smov 8   ;;  %s3516_s16 = sld [smem:[#allocation36_spill]] }
 0x136   : > { %2046 = dma.hbm_to_vmem [thread:$0]  (!%p3014_p5), %s3021_s12, 11264, %s3023_s27, %s3025_s11, %s3502_s15, %s3502_s15, %s3515_s5  }
 0x13b   : > { %p3517_p12 = scmp.ne.s32.totalorder %s3516_s16, 0 }
 0x13c   : > { %s432_s2 = sand.u32 (!%p3517_p12), 1, %s2584_s17  }
 0x13d   : > { %430 = sbr.rel (%p3517_p12) target bundleno = 1188 (0x4a4), region = 60  ;;  %s433_s28 = scalar_lea.sflag (!%p3517_p12), [#allocation6], %s432_s2 }
 0x13e   : > { %s1974_s19 = smul.u32 (!%p3517_p12), 704, %s432_s2 }
 0x140   : > { %s436_s1 = scalar_lea.vmem (!%p3517_p12), [#allocation5], %s1974_s19 }
 0x144   : > { %2539 = dma.done.wait (%p2980_p0), %s433_s28, 11264  }
 0x145   : > { %2541 = vsyncadd (%p2980_p0), %s433_s28, 4294956032  ;;  %s3518_s24 = sld [smem:[#allocation35_spill]] }
 0x14b   : > { %p3519_p10 = scmp.ne.s32.totalorder %s3518_s24, 0 }
 0x14d   : > { %2543 = dma.done.wait (%p3519_p10), [#allocation9], 656  }
 0x14e   : > { %2545 = vsyncadd (%p3519_p10), [#allocation9], 4294966640 }
 0x14f   : > { %2547 = dma.done.wait (%p3519_p10), [#allocation12], 1168  }
 0x150   : > { %2549 = vsyncadd (%p3519_p10), [#allocation12], 4294966128 }
 0x151   : > { %2551 = dma.done.wait (%p3519_p10), [#allocation15], 32  }
 0x152   : > { %2553 = vsyncadd (%p3519_p10), [#allocation15], 4294967264 }
 0x153   : > { %2555 = dma.done.wait (%p3519_p10), [#allocation18], 80  }
 0x154   : > { %2557 = vsyncadd (%p3519_p10), [#allocation18], 4294967216 }
 0x155   : > { %2559 = dma.done.wait (%p3519_p10), [#allocation21], 16  }
 0x156   : > { %2561 = vsyncadd (%p3519_p10), [#allocation21], 4294967280  ;;  %s3520_s15 = sld [smem:[#allocation33_spill]]  ;;  %s2622_s27 = smov 8   ;;  %vm520_vm0 = vcmask 31744   ;;  %v840_v21 = vld [vmem:[#allocation8] sm:$0xff] }
 0x157   : > { %s2623_s11 = smov 4   ;;  %s2624_s14 = smov 12   ;;  %v841_v22 = vld [vmem:[#allocation8 + $0x8] sm:$0xff]  ;;  %v842_v26 = vld [vmem:[#allocation8 + $0x10] sm:$0xff]  ;;  %v843_v27 = vld [vmem:[#allocation8 + $0x18] sm:$0xff]  ;;  %vm864_vm1 = vcmask 1043456  }
 0x158   : > { %s2625_s20 = smov 16   ;;  %s2626_s4 = smov 20   ;;  %v1948_v23 = vpack.c.bf16 %v841_v22, %v840_v21  ;;  %v1952_v28 = vpack.c.bf16 %v843_v27, %v842_v26  ;;  %v844_v29 = vld [vmem:[#allocation8 + $0x20] sm:$0xf]  ;;  %vm559_vm2 = vcmask 64544   ;;  %vm596_vm3 = vcmask 97344  }
 0x159   : > { %s2627_s5 = smov 24   ;;  %s2628_s16 = smov 28   ;;  %vm635_vm4 = vcmask 130144   ;;  %vm674_vm5 = vcmask 162944   ;;  %vm711_vm6 = vcmask 195744   ;;  %vm751_vm7 = vcmask 228544  }
 0x15a   : > { %1949 = vmatprep.subr.bf16.mxu0 %v1948_v23  ;;  %s2629_s2 = smov 32   ;;  %vm790_vm8 = vcmask 261344   ;;  %vm827_vm9 = vcmask 294144   ;;  %vm845_vm10 = vcmask 293888   ;;  %vm1037_vm11 = vcmask 57344   ;;  %s2632_s24 = smov 48  }
 0x15b   : > { %1951 = vmatpush3.bf16.msra.mxu0 %v1948_v23  ;;  %p3524_p3 = scmp.ne.s32.totalorder %s3511_s10, 0 }
 0x15c   : > { %s1864_s25 = sshll.u32 %s3520_s15, 6  ;;  %1953 = vmatprep.subr.bf16.mxu0 %v1952_v28  ;;  %s1778_s19 = sshll.u32 %s3520_s15, 2 }
 0x15d   : > { %s3084_s12 = scalar_lea.vmem %s436_s1, %s1864_s25 [#allocation5]  ;;  %s1779_s28 = sadd.s32 4294967295, %s1778_s19 }
 0x15e   : > { %v566_v0 = vld [vmem:[%s3084_s12 + $0x1] sm:$0xff]  ;;  %v1782_v1 = vld [vmem:[%s3084_s12 + $0xb0] sm:$0xff]  ;;  %s2631_s1 = smov 40   ;;  %s2633_s25 = smov 56  }
 0x15f   : > { %578 = vrot.lane.b32.xlu1 %v566_v0, %s2622_s27  ;;  %541 = vrot.lane.b32.xlu0 %v1782_v1, %s2623_s11  ;;  %v3091_v2 = vld [vmem:[%s3084_s12 + $0x11] sm:$0xff]  ;;  %v1783_v3 = vld [vmem:[%s3084_s12 + $0xc0] sm:$0xff] }
 0x160   : > { %v1810_v4 = vld [vmem:[%s3084_s12 + $0x10] sm:$0xff]  ;;  %v1789_v6 = vld [vmem:[%s3084_s12 + $0x160] sm:$0xff]  ;;  %1955 = vmatpush3.bf16.msra.mxu0 %v1952_v28 }
 0x161   : > { %522 = vst.msk [vmem:[#allocation2 + $0x8] sm:$0xff] %vm520_vm0, %v1810_v4  ;;  %v1790_v5 = vld [vmem:[%s3084_s12 + $0x170] sm:$0xff]  ;;  %v1811_v7 = vld [vmem:[%s3084_s12 + $0x20] sm:$0xff]  ;;  %1905 = vmatprep.subr.msk.mxu0 %vm864_vm1, %v844_v29 }
 0x162   : > { %523 = vst.msk [vmem:[#allocation2 + $0x10] sm:$0xff] %vm520_vm0, %v1811_v7  ;;  %v3106_v8 = vld [vmem:[%s3084_s12 + $0x30] sm:$0xff]  ;;  %v3111_v11 = vld [vmem:[%s3084_s12 + $0x40] sm:$0xff] }
 0x163   : > { %580 = vrot.lane.b32.xlu1 %v3091_v2, %s2622_s27  ;;  %543 = vrot.lane.b32.xlu0 %v1783_v3, %s2623_s11  ;;  %v1784_v9 = vld [vmem:[%s3084_s12 + $0xd0] sm:$0xff]  ;;  %524 = vst.msk [vmem:[#allocation2 + $0x18] sm:$0xff] %vm520_vm0, %v3106_v8  ;;  %525 = vst.msk [vmem:[#allocation2 + $0x20] sm:$0xff] %vm520_vm0, %v3111_v11  ;;  %v1802_v13 = vld [vmem:[%s3084_s12 + $0x161] sm:$0xff] }
 0x164   : > { %v1796_v10 = vld [vmem:[%s3084_s12 + $0x210] sm:$0xff]  ;;  %v3126_v14 = vld [vmem:[%s3084_s12 + $0x220] sm:$0xff]  ;;  %1906 = vmatpush3.msk.msra.mxu0 %vm864_vm1, %v844_v29 }
 0x165   : > { %v3118_v12 = vld [vmem:[%s3084_s12 + $0x50] sm:$0xff]  ;;  %v514_v15 = vld [vmem:[%s3084_s12] sm:$0xff] }
 0x166   : > { %526 = vst.msk [vmem:[#allocation2 + $0x28] sm:$0xff] %vm520_vm0, %v3118_v12  ;;  %521 = vst.msk [vmem:[#allocation2] sm:$0xff] %vm520_vm0, %v514_v15  ;;  %v568_v16 = vld [vmem:[%s3084_s12 + $0x21] sm:$0xff]  ;;  %v1803_v18 = vld [vmem:[%s3084_s12 + $0x171] sm:$0xff] }
 0x167   : > { %619 = vrot.lane.b32.xlu1 %v1790_v5, %s2624_s14  ;;  %617 = vrot.lane.b32.xlu0 %v1789_v6, %s2624_s14  ;;  %v1785_v17 = vld [vmem:[%s3084_s12 + $0xe0] sm:$0xff]  ;;  %v569_v20 = vld [vmem:[%s3084_s12 + $0x31] sm:$0xff] }
 0x168   : > { %v1791_v19 = vld [vmem:[%s3084_s12 + $0x180] sm:$0xff]  ;;  %v3147_v24 = vld [vmem:[%s3084_s12 + $0x230] sm:$0xff] }
 0x169   : > { %v1792_v25 = vld [vmem:[%s3084_s12 + $0x190] sm:$0xff]  ;;  %v3157_v30 = vld [vmem:[%s3084_s12 + $0x240] sm:$0xff] }
 0x16a   : > { %v1786_v31 = vld [vmem:[%s3084_s12 + $0xf0] sm:$0xff]  ;;  %v1804_v32 = vld [vmem:[%s3084_s12 + $0x181] sm:$0xff] }
 0x16b   : > { %545 = vrot.lane.b32.xlu1 %v1784_v9, %s2623_s11  ;;  %656 = vrot.lane.b32.xlu0 %v1796_v10, %s2625_s20  ;;  %v1787_v33 = vld [vmem:[%s3084_s12 + $0x100] sm:$0xff]  ;;  %v1805_v35 = vld [vmem:[%s3084_s12 + $0x191] sm:$0xff] }
 0x16c   : > { %v570_v34 = vld [vmem:[%s3084_s12 + $0x41] sm:$0xff]  ;;  %v571_v36 = vld [vmem:[%s3084_s12 + $0x51] sm:$0xff] }
 0x16d   : > { %v1793_v37 = vld [vmem:[%s3084_s12 + $0x1a0] sm:$0xff]  ;;  %v1794_v38 = vld [vmem:[%s3084_s12 + $0x1b0] sm:$0xff] }
 0x16e   : > { %v3185_v39 = vld [vmem:[%s3084_s12 + $0x250] sm:$0xff]  ;;  %v1801_v40 = vld [vmem:[%s3084_s12 + $0x260] sm:$0xff] }
 0x16f   : > { %693 = vrot.lane.b32.xlu1 %v1802_v13, %s2626_s4  ;;  %658 = vrot.lane.b32.xlu0 %v3126_v14, %s2625_s20  ;;  %v1806_v41 = vld [vmem:[%s3084_s12 + $0x1a1] sm:$0xff]  ;;  %v1807_v42 = vld [vmem:[%s3084_s12 + $0x1b1] sm:$0xff] }
 0x170   : > { %v1815_v43 = vld [vmem:[%s3084_s12 + $0x60] sm:$0xff]  ;;  %v1823_v44 = vld [vmem:[%s3084_s12 + $0x110] sm:$0xff] }
 0x171   : > { %v1829_v45 = vld [vmem:[%s3084_s12 + $0x61] sm:$0xff]  ;;  %s2634_s12 = smov 64  }
 0x173   : > { %582 = vrot.lane.b32.xlu1 %v568_v16, %s2622_s27  ;;  %547 = vrot.lane.b32.xlu0 %v1785_v17, %s2623_s11 }
 0x177   : > { %733 = vrot.lane.b32.xlu1 %v1810_v4, %s2627_s5  ;;  %695 = vrot.lane.b32.xlu0 %v1803_v18, %s2626_s4 }
 0x17b   : > { %621 = vrot.lane.b32.xlu1 %v1791_v19, %s2624_s14  ;;  %584 = vrot.lane.b32.xlu0 %v569_v20, %s2622_s27 }
 0x17f   : > { %772 = vrot.lane.b32.xlu1 %v1783_v3, %s2628_s16  ;;  %735 = vrot.lane.b32.xlu0 %v1811_v7, %s2627_s5 }
 0x183   : > { %660 = vrot.lane.b32.xlu1 %v3147_v24, %s2625_s20  ;;  %623 = vrot.lane.b32.xlu0 %v1792_v25, %s2624_s14 }
 0x187   : > { %809 = vrot.lane.b32.xlu1 %v3091_v2, %s2629_s2  ;;  %774 = vrot.lane.b32.xlu0 %v1784_v9, %s2628_s16 }
 0x18b   : > { %662 = vrot.lane.b32.xlu1 %v3157_v30, %s2625_s20  ;;  %549 = vrot.lane.b32.xlu0 %v1786_v31, %s2623_s11 }
 0x18f   : > { %811 = vrot.lane.b32.xlu1 %v568_v16, %s2629_s2  ;;  %697 = vrot.lane.b32.xlu0 %v1804_v32, %s2626_s4 }
 0x193   : > { %551 = vrot.lane.b32.xlu0 %v1787_v33, %s2623_s11  ;;  %586 = vrot.lane.b32.xlu1 %v570_v34, %s2622_s27  ;;  %s3521_s11 = sld [smem:[#allocation31_spill]] }
 0x197   : > { %699 = vrot.lane.b32.xlu0 %v1805_v35, %s2626_s4  ;;  %737 = vrot.lane.b32.xlu1 %v3106_v8, %s2627_s5 }
 0x19b   : > { %588 = vrot.lane.b32.xlu0 %v571_v36, %s2622_s27  ;;  %625 = vrot.lane.b32.xlu1 %v1793_v37, %s2624_s14 }
 0x19f   : > { %739 = vrot.lane.b32.xlu0 %v3111_v11, %s2627_s5  ;;  %776 = vrot.lane.b32.xlu1 %v1785_v17, %s2628_s16 }
 0x1a3   : > { %627 = vrot.lane.b32.xlu0 %v1794_v38, %s2624_s14  ;;  %664 = vrot.lane.b32.xlu1 %v3185_v39, %s2625_s20  ;;  %s506_s14 = sand.u32 1, %s3521_s11  }
 0x1a4   : > { %s3389_s15 = scalar_lea.sflag [#allocation7], %s506_s14 }
 0x1a7   : > { %778 = vrot.lane.b32.xlu0 %v1786_v31, %s2628_s16  ;;  %813 = vrot.lane.b32.xlu1 %v569_v20, %s2629_s2 }
 0x1ab   : > { %666 = vrot.lane.b32.xlu0 %v1801_v40, %s2625_s20  ;;  %701 = vrot.lane.b32.xlu1 %v1806_v41, %s2626_s4  ;;  %v2630_v40 = vmov 0.0   ;;  %v995_v41 = vstv %s1779_s28 }
 0x1ac   : > { %1039 = vst.msk [vmem:[#allocation3 + $0x10] sm:$0x1] %vm1037_vm11, %v2630_v40  ;;  %1038 = vst.msk [vmem:[#allocation3] sm:$0x1] %vm1037_vm11, %v2630_v40  ;;  %vm1001_vm14 = vcmp.ge.s32.totalorder %v995_v41, 0  ;;  %vm1007_vm15 = vcmp.lt.s32.totalorder %v995_v41, 8 }
 0x1ad   : > { %1040 = vst.msk [vmem:[#allocation3 + $0x20] sm:$0x1] %vm1037_vm11, %v2630_v40  ;;  %1041 = vst.msk [vmem:[#allocation3 + $0x30] sm:$0x1] %vm1037_vm11, %v2630_v40 }
 0x1ae   : > { %1042 = vst.msk [vmem:[#allocation3 + $0x40] sm:$0x1] %vm1037_vm11, %v2630_v40  ;;  %1043 = vst.msk [vmem:[#allocation3 + $0x50] sm:$0x1] %vm1037_vm11, %v2630_v40 }
 0x1af   : > { %815 = vrot.lane.b32.xlu0 %v570_v34, %s2629_s2  ;;  %703 = vrot.lane.b32.xlu1 %v1807_v42, %s2626_s4  ;;  %1044 = vst.msk [vmem:[#allocation3 + $0x9] sm:$0x1] %vm1037_vm11, %v2630_v40  ;;  %1045 = vst.msk [vmem:[#allocation3 + $0x19] sm:$0x1] %vm1037_vm11, %v2630_v40  ;;  %v3268_v42 = vld [vmem:[#allocation10] ss:$0 sm:$0xff] }
 0x1b0   : > { %1046 = vst.msk [vmem:[#allocation3 + $0x29] sm:$0x1] %vm1037_vm11, %v2630_v40  ;;  %1047 = vst.msk [vmem:[#allocation3 + $0x39] sm:$0x1] %vm1037_vm11, %v2630_v40  ;;  %s1777_s4 = sshll.u32 %s506_s14, 5 }
 0x1b1   : > { %1048 = vst.msk [vmem:[#allocation3 + $0x49] sm:$0x1] %vm1037_vm11, %v2630_v40  ;;  %1049 = vst.msk [vmem:[#allocation3 + $0x59] sm:$0x1] %vm1037_vm11, %v2630_v40  ;;  %v1278_v40 = vld [vmem:[#allocation13 + $0x38] sm:$0xff] }
 0x1b3   : > { %741 = vrot.lane.b32.xlu0 %v3118_v12, %s2627_s5  ;;  %743 = vrot.lane.b32.xlu1 %v1815_v43, %s2627_s5 }
 0x1b7   : > { %780 = vrot.lane.b32.xlu0 %v1787_v33, %s2628_s16  ;;  %782 = vrot.lane.b32.xlu1 %v1823_v44, %s2628_s16  ;;  %v3270_v44 = vld [vmem:[#allocation11] ss:$0 sm:$0xff] }
 0x1bb   : > { %817 = vrot.lane.b32.xlu0 %v571_v36, %s2629_s2  ;;  %819 = vrot.lane.b32.xlu1 %v1829_v45, %s2629_s2 }
 0x1d1   : > { %v579_v46 = vpop.permute.xlu1 %578  ;;  %v542_v47 = vpop.permute.xlu0 %541 }
 0x1d2   : > { %560 = vst.msk [vmem:[#allocation2] sm:$0xff] %vm559_vm2, %v542_v47 }
 0x1d3   : > { %597 = vst.msk [vmem:[#allocation2] sm:$0xff] %vm596_vm3, %v579_v46 }
 0x1d5   : > { %v581_v48 = vpop.permute.xlu1 %580  ;;  %v544_v49 = vpop.permute.xlu0 %543 }
 0x1d6   : > { %561 = vst.msk [vmem:[#allocation2 + $0x8] sm:$0xff] %vm559_vm2, %v544_v49 }
 0x1d7   : > { %598 = vst.msk [vmem:[#allocation2 + $0x8] sm:$0xff] %vm596_vm3, %v581_v48 }
 0x1d9   : > { %v620_v50 = vpop.permute.xlu1 %619  ;;  %v618_v51 = vpop.permute.xlu0 %617 }
 0x1da   : > { %637 = vst.msk [vmem:[#allocation2 + $0x8] sm:$0xff] %vm635_vm4, %v620_v50  ;;  %636 = vst.msk [vmem:[#allocation2] sm:$0xff] %vm635_vm4, %v618_v51 }
 0x1dd   : > { %v546_v52 = vpop.permute.xlu1 %545  ;;  %v657_v53 = vpop.permute.xlu0 %656 }
 0x1de   : > { %562 = vst.msk [vmem:[#allocation2 + $0x10] sm:$0xff] %vm559_vm2, %v546_v52 }
 0x1df   : > { %675 = vst.msk [vmem:[#allocation2] sm:$0xff] %vm674_vm5, %v657_v53 }
 0x1e1   : > { %v694_v54 = vpop.permute.xlu1 %693  ;;  %v659_v55 = vpop.permute.xlu0 %658 }
 0x1e2   : > { %712 = vst.msk [vmem:[#allocation2] sm:$0xff] %vm711_vm6, %v694_v54 }
 0x1e3   : > { %676 = vst.msk [vmem:[#allocation2 + $0x8] sm:$0xff] %vm674_vm5, %v659_v55 }
 0x1e5   : > { %v583_v56 = vpop.permute.xlu1 %582  ;;  %v548_v57 = vpop.permute.xlu0 %547 }
 0x1e6   : > { %599 = vst.msk [vmem:[#allocation2 + $0x10] sm:$0xff] %vm596_vm3, %v583_v56 }
 0x1e7   : > { %563 = vst.msk [vmem:[#allocation2 + $0x18] sm:$0xff] %vm559_vm2, %v548_v57 }
 0x1e9   : > { %v734_v58 = vpop.permute.xlu1 %733  ;;  %v696_v59 = vpop.permute.xlu0 %695 }
 0x1ea   : > { %752 = vst.msk [vmem:[#allocation2] sm:$0xff] %vm751_vm7, %v734_v58 }
 0x1eb   : > { %713 = vst.msk [vmem:[#allocation2 + $0x8] sm:$0xff] %vm711_vm6, %v696_v59 }
 0x1ed   : > { %v622_v60 = vpop.permute.xlu1 %621  ;;  %v585_v61 = vpop.permute.xlu0 %584 }
 0x1ee   : > { %638 = vst.msk [vmem:[#allocation2 + $0x10] sm:$0xff] %vm635_vm4, %v622_v60  ;;  %v998_v60 = vadd.s32 3, %v995_v41 }
 0x1ef   : > { %600 = vst.msk [vmem:[#allocation2 + $0x18] sm:$0xff] %vm596_vm3, %v585_v61  ;;  %v997_v61 = vadd.s32 2, %v995_v41 }
 0x1f1   : > { %v773_v62 = vpop.permute.xlu1 %772  ;;  %v736_v63 = vpop.permute.xlu0 %735 }
 0x1f2   : > { %791 = vst.msk [vmem:[#allocation2] sm:$0xff] %vm790_vm8, %v773_v62 }
 0x1f3   : > { %753 = vst.msk [vmem:[#allocation2 + $0x8] sm:$0xff] %vm751_vm7, %v736_v63 }
 0x1f5   : > { %v661_v0 = vpop.permute.xlu1 %660  ;;  %v624_v1 = vpop.permute.xlu0 %623 }
 0x1f6   : > { %677 = vst.msk [vmem:[#allocation2 + $0x10] sm:$0xff] %vm674_vm5, %v661_v0 }
 0x1f7   : > { %639 = vst.msk [vmem:[#allocation2 + $0x18] sm:$0xff] %vm635_vm4, %v624_v1 }
 0x1f9   : > { %v810_v2 = vpop.permute.xlu1 %809  ;;  %v775_v3 = vpop.permute.xlu0 %774 }
 0x1fa   : > { %828 = vst.msk [vmem:[#allocation2] sm:$0xff] %vm827_vm9, %v810_v2 }
 0x1fb   : > { %792 = vst.msk [vmem:[#allocation2 + $0x8] sm:$0xff] %vm790_vm8, %v775_v3 }
 0x1fd   : > { %v663_v4 = vpop.permute.xlu1 %662  ;;  %v550_v5 = vpop.permute.xlu0 %549 }
 0x1fe   : > { %678 = vst.msk [vmem:[#allocation2 + $0x18] sm:$0xff] %vm674_vm5, %v663_v4 }
 0x1ff   : > { %564 = vst.msk [vmem:[#allocation2 + $0x20] sm:$0xff] %vm559_vm2, %v550_v5 }
 0x201   : > { %v812_v6 = vpop.permute.xlu1 %811  ;;  %v698_v7 = vpop.permute.xlu0 %697  ;;  %v834_v8 = vld [vmem:[#allocation2] sm:$0xff] }
 0x202   : > { %829 = vst.msk [vmem:[#allocation2 + $0x8] sm:$0xff] %vm827_vm9, %v812_v6  ;;  %1907 = vmatprep.mubr.msk.f32.mxu0 %vm845_vm10, %v834_v8  ;;  %v1000_v8 = vadd.s32 5, %v995_v41 }
 0x203   : > { %714 = vst.msk [vmem:[#allocation2 + $0x10] sm:$0xff] %vm711_vm6, %v698_v7 }
 0x204   : > { %vm1006_vm11 = vcmp.ge.s32.totalorder %v1000_v8, 0 }
 0x205   : > { %v552_v9 = vpop.permute.xlu0 %551  ;;  %v587_v10 = vpop.permute.xlu1 %586 }
 0x206   : > { %565 = vst.msk [vmem:[#allocation2 + $0x28] sm:$0xff] %vm559_vm2, %v552_v9  ;;  %v999_v9 = vadd.s32 4, %v995_v41 }
 0x207   : > { %601 = vst.msk [vmem:[#allocation2 + $0x20] sm:$0xff] %vm596_vm3, %v587_v10 }
 0x209   : > { %v700_v11 = vpop.permute.xlu0 %699  ;;  %v835_v12 = vld [vmem:[#allocation2 + $0x8] sm:$0xff]  ;;  %v738_v13 = vpop.permute.xlu1 %737 }
 0x20a   : > { %715 = vst.msk [vmem:[#allocation2 + $0x18] sm:$0xff] %vm711_vm6, %v700_v11  ;;  %1908 = vmatmul.mubr.msk.f32.vlgmr.msra.gmra.mrb[0].mxu0 %vm845_vm10, %v835_v12 }
 0x20b   : > { %754 = vst.msk [vmem:[#allocation2 + $0x10] sm:$0xff] %vm751_vm7, %v738_v13 }
 0x20d   : > { %v589_v15 = vpop.permute.xlu0 %588  ;;  %v626_v16 = vpop.permute.xlu1 %625 }
 0x20e   : > { %602 = vst.msk [vmem:[#allocation2 + $0x28] sm:$0xff] %vm596_vm3, %v589_v15  ;;  %vm1050_vm3 = vcmask 64512  }
 0x20f   : > { %640 = vst.msk [vmem:[#allocation2 + $0x20] sm:$0xff] %vm635_vm4, %v626_v16 }
 0x211   : > { %v740_v17 = vpop.permute.xlu0 %739  ;;  %v777_v18 = vpop.permute.xlu1 %776 }
 0x212   : > { %755 = vst.msk [vmem:[#allocation2 + $0x18] sm:$0xff] %vm751_vm7, %v740_v17 }
 0x213   : > { %793 = vst.msk [vmem:[#allocation2 + $0x10] sm:$0xff] %vm790_vm8, %v777_v18 }
 0x215   : > { %v628_v19 = vpop.permute.xlu0 %627  ;;  %v665_v20 = vpop.permute.xlu1 %664 }
 0x216   : > { %641 = vst.msk [vmem:[#allocation2 + $0x28] sm:$0xff] %vm635_vm4, %v628_v19  ;;  %vm1013_vm4 = vmand %vm1001_vm14, %vm1007_vm15  ;;  %vm1011_vm14 = vcmp.lt.s32.totalorder %v999_v9, 8 }
 0x217   : > { %679 = vst.msk [vmem:[#allocation2 + $0x20] sm:$0xff] %vm674_vm5, %v665_v20 }
 0x219   : > { %v779_v21 = vpop.permute.xlu0 %778  ;;  %v814_v22 = vpop.permute.xlu1 %813 }
 0x21a   : > { %794 = vst.msk [vmem:[#allocation2 + $0x18] sm:$0xff] %vm790_vm8, %v779_v21 }
 0x21b   : > { %830 = vst.msk [vmem:[#allocation2 + $0x10] sm:$0xff] %vm827_vm9, %v814_v22 }
 0x21d   : > { %v667_v23 = vpop.permute.xlu0 %666  ;;  %v702_v25 = vpop.permute.xlu1 %701 }
 0x21e   : > { %680 = vst.msk [vmem:[#allocation2 + $0x28] sm:$0xff] %vm674_vm5, %v667_v23  ;;  %vm1004_vm5 = vcmp.ge.s32.totalorder %v998_v60, 0 }
 0x21f   : > { %716 = vst.msk [vmem:[#allocation2 + $0x20] sm:$0xff] %vm711_vm6, %v702_v25 }
 0x221   : > { %v816_v26 = vpop.permute.xlu0 %815  ;;  %v704_v28 = vpop.permute.xlu1 %703 }
 0x222   : > { %v836_v27 = vld [vmem:[#allocation2 + $0x10] sm:$0xff]  ;;  %831 = vst.msk [vmem:[#allocation2 + $0x18] sm:$0xff] %vm827_vm9, %v816_v26  ;;  %v1271_v26 = vld [vmem:[#allocation13] sm:$0xff] }
 0x223   : > { %1910 = vmatprep.mubr.msk.f32.mxu0 %vm845_vm10, %v836_v27  ;;  %717 = vst.msk [vmem:[#allocation2 + $0x28] sm:$0xff] %vm711_vm6, %v704_v28  ;;  %vm1010_vm6 = vcmp.lt.s32.totalorder %v998_v60, 8  ;;  %v1272_v27 = vld [vmem:[#allocation13 + $0x8] sm:$0xff] }
 0x224   : > { %v1956_v28 = vpack.c.bf16 %v1272_v27, %v1271_v26  ;;  %v1843_v26 = vld [vmem:[#allocation14] ss:$0 sm:$0xff]  ;;  %v1857_v27 = vld [vmem:[#allocation20] ss:$0 sm:$0xff] }
 0x225   : > { %v742_v29 = vpop.permute.xlu0 %741  ;;  %v744_v31 = vpop.permute.xlu1 %743 }
 0x226   : > { %756 = vst.msk [vmem:[#allocation2 + $0x20] sm:$0xff] %vm751_vm7, %v742_v29  ;;  %757 = vst.msk [vmem:[#allocation2 + $0x28] sm:$0xff] %vm751_vm7, %v744_v31  ;;  %vm1003_vm7 = vcmp.ge.s32.totalorder %v997_v61, 0  ;;  %1957 = vmatprep.subr.bf16.mxu1 %v1956_v28  ;;  %v1273_v29 = vld [vmem:[#allocation13 + $0x10] sm:$0xff]  ;;  %v1274_v31 = vld [vmem:[#allocation13 + $0x18] sm:$0xff] }
 0x227   : > { %1959 = vmatpush3.bf16.msra.mxu1 %v1956_v28 }
 0x229   : > { %v837_v32 = vld [vmem:[#allocation2 + $0x18] sm:$0xff]  ;;  %v781_v33 = vpop.permute.xlu0 %780  ;;  %v783_v34 = vpop.permute.xlu1 %782 }
 0x22a   : > { %1911 = vmatmul.mubr.msk.f32.gmra.mrb[2].mxu0 %vm845_vm10, %v837_v32  ;;  %795 = vst.msk [vmem:[#allocation2 + $0x20] sm:$0xff] %vm790_vm8, %v781_v33  ;;  %796 = vst.msk [vmem:[#allocation2 + $0x28] sm:$0xff] %vm790_vm8, %v783_v34  ;;  %vm1009_vm8 = vcmp.lt.s32.totalorder %v997_v61, 8  ;;  %v1960_v32 = vpack.c.bf16 %v1274_v31, %v1273_v29  ;;  %v1275_v34 = vld [vmem:[#allocation13 + $0x20] sm:$0xff]  ;;  %v1844_v31 = vld [vmem:[#allocation16] ss:$0 sm:$0xff] }
 0x22c   : > { %1961 = vmatprep.subr.bf16.mxu1 %v1960_v32 }
 0x22d   : > { %v818_v35 = vpop.permute.xlu0 %817  ;;  %v820_v36 = vpop.permute.xlu1 %819  ;;  %1963 = vmatpush3.bf16.msra.mxu1 %v1960_v32 }
 0x22e   : > { %832 = vst.msk [vmem:[#allocation2 + $0x20] sm:$0xff] %vm827_vm9, %v818_v35  ;;  %833 = vst.msk [vmem:[#allocation2 + $0x28] sm:$0xff] %vm827_vm9, %v820_v36  ;;  %v1276_v35 = vld [vmem:[#allocation13 + $0x28] sm:$0xff] }
 0x22f   : > { %vm1016_vm9 = vmand %vm1004_vm5, %vm1010_vm6  ;;  %v1964_v36 = vpack.c.bf16 %v1276_v35, %v1275_v34  ;;  %vm1161_vm5 = vcmask 326912   ;;  %vm1186_vm6 = vcmask 392512  }
 0x231   : > { %1965 = vmatprep.subr.bf16.mxu1 %v1964_v36 }
 0x232   : > { %1967 = vmatpush3.bf16.msra.mxu1 %v1964_v36 }
 0x235   : > { %v838_v37 = vld [vmem:[#allocation2 + $0x20] sm:$0xff]  ;;  %v839_v38 = vld [vmem:[#allocation2 + $0x28] sm:$0xff] }
 0x236   : > { %1913 = vmatprep.mubr.msk.f32.mxu0 %vm845_vm10, %v838_v37 }
 0x237   : > { %1914 = vmatmul.mubr.msk.f32.gmra.mrb[4].mxu0 %vm845_vm10, %v839_v38  ;;  %vm1015_vm10 = vmand %vm1003_vm7, %vm1009_vm8  ;;  %v1277_v38 = vld [vmem:[#allocation13 + $0x30] sm:$0xff]  ;;  %vm1212_vm7 = vcmask 458112   ;;  %vm1237_vm8 = vcmask 523712  }
 0x238   : > { %1942 = vmatprep.mubr.msk.f32.mxu0 %vm520_vm0, %v3126_v14  ;;  %v996_v14 = vadd.s32 1, %v995_v41  ;;  %v1968_v41 = vpack.c.bf16 %v1278_v40, %v1277_v38 }
 0x23a   : > { %vm1002_vm12 = vcmp.ge.s32.totalorder %v996_v14, 0  ;;  %vm1008_vm13 = vcmp.lt.s32.totalorder %v996_v14, 8  ;;  %1969 = vmatprep.subr.bf16.mxu1 %v1968_v41  ;;  %v1279_v14 = vld [vmem:[#allocation13 + $0x40] sm:$0xff] }
 0x23b   : > { %vm1014_vm2 = vmand %vm1002_vm12, %vm1008_vm13  ;;  %vm1012_vm12 = vcmp.lt.s32.totalorder %v1000_v8, 8  ;;  %vm1005_vm13 = vcmp.ge.s32.totalorder %v999_v9, 0  ;;  %1971 = vmatpush3.bf16.msra.mxu1 %v1968_v41 }
 0x23c   : > { %vm1018_vm15 = vmand %vm1006_vm11, %vm1012_vm12  ;;  %1932 = vmatprep.subr.mxu1 %v1279_v14 }
 0x23f   : > { %1933 = vmatpush3.msra.mxu1 %v1279_v14 }
 0x2dd   : > { %v1909_v43 = vpop.f32.mrb[0].mxu0 }
 0x2de   : > { %v971_v45 = vmul.f32 %v1909_v43, %v3268_v42  ;;  %v934_v46 = vpop.f32.mrb[1].mxu0 }
 0x2df   : > { %v970_v47 = vmul.f32 %v3268_v42, %v934_v46 }
 0x2e0   : > { %v984_v48 = vadd.f32 %v3270_v44, %v971_v45 }
 0x2e1   : > { %v983_v49 = vadd.f32 %v3270_v44, %v970_v47 }
 0x2e2   : > { %v990_v50 = vmax.f32 %v984_v48, 0.0 }
 0x2e3   : > { %v989_v51 = vmax.f32 %v983_v49, 0.0 }
 0x2e4   : > { %v1032_v52 = vsel %vm1014_vm2, %v990_v50, 0.0  ;;  %vm1017_vm2 = vmand %vm1005_vm13, %vm1011_vm14 }
 0x2e5   : > { %1052 = vst.msk [vmem:[#allocation3 + $0x11] sm:$0xff] %vm1050_vm3, %v1032_v52  ;;  %v1031_v53 = vsel %vm1013_vm4, %v989_v51, 0.0  ;;  %vm1136_vm4 = vcmask 261312  }
 0x2e6   : > { %1051 = vst.msk [vmem:[#allocation3 + $0x1] sm:$0xff] %vm1050_vm3, %v1031_v53 }
 0x2ec   : > { %v1116_v54 = vld [vmem:[#allocation3 + $0x10] sm:$0xff] }
 0x2ed   : > { %v1066_v55 = vld [vmem:[#allocation3 + $0x11] sm:$0xff]  ;;  %1124 = vrot.lane.b32.xlu0 %v1116_v54, %s2627_s5  ;;  %1062 = vst.msk [vmem:[#allocation4 + $0x8] sm:$0xff] %vm1050_vm3, %v1116_v54  ;;  %v1057_v56 = vld [vmem:[#allocation3] sm:$0xff] }
 0x2ee   : > { %1075 = vrot.lane.b32.xlu1 %v1066_v55, %s2622_s27  ;;  %v1091_v57 = vld [vmem:[#allocation3 + $0x12] sm:$0xff]  ;;  %1061 = vst.msk [vmem:[#allocation4] sm:$0xff] %vm1050_vm3, %v1057_v56  ;;  %v1065_v58 = vld [vmem:[#allocation3 + $0x1] sm:$0xff] }
 0x2ef   : > { %v1090_v59 = vld [vmem:[#allocation3 + $0x2] sm:$0xff] }
 0x2f1   : > { %1149 = vrot.lane.b32.xlu0 %v1066_v55, %s2629_s2 }
 0x2f2   : > { %1100 = vrot.lane.b32.xlu1 %v1091_v57, %s2625_s20 }
 0x2f5   : > { %1073 = vrot.lane.b32.xlu0 %v1065_v58, %s2622_s27 }
 0x2f6   : > { %1174 = vrot.lane.b32.xlu1 %v1091_v57, %s2631_s1 }
 0x2f9   : > { %1098 = vrot.lane.b32.xlu0 %v1090_v59, %s2625_s20 }
 0x2fd   : > { %v1912_v62 = vpop.f32.mrb[2].mxu0 }
 0x2fe   : > { %v973_v63 = vmul.f32 %v1912_v62, %v3268_v42  ;;  %v944_v0 = vpop.f32.mrb[3].mxu0 }
 0x2ff   : > { %v972_v1 = vmul.f32 %v3268_v42, %v944_v0 }
 0x300   : > { %v986_v2 = vadd.f32 %v3270_v44, %v973_v63 }
 0x301   : > { %v985_v3 = vadd.f32 %v3270_v44, %v972_v1 }
 0x302   : > { %v992_v4 = vmax.f32 %v986_v2, 0.0 }
 0x303   : > { %v991_v5 = vmax.f32 %v985_v3, 0.0 }
 0x304   : > { %v1034_v6 = vsel %vm1016_vm9, %v992_v4, 0.0  ;;  %vm1262_vm9 = vcmask 589312  }
 0x305   : > { %1054 = vst.msk [vmem:[#allocation3 + $0x31] sm:$0xff] %vm1050_vm3, %v1034_v6  ;;  %v1033_v7 = vsel %vm1015_vm10, %v991_v5, 0.0  ;;  %vm1280_vm10 = vcmask 588800  }
 0x306   : > { %1053 = vst.msk [vmem:[#allocation3 + $0x21] sm:$0xff] %vm1050_vm3, %v1033_v7 }
 0x30a   : > { %v1915_v10 = vpop.f32.mrb[4].mxu0 }
 0x30b   : > { %v975_v11 = vmul.f32 %v1915_v10, %v3268_v42  ;;  %v954_v12 = vpop.f32.mrb[5].mxu0 }
 0x30c   : > { %v1118_v13 = vld [vmem:[#allocation3 + $0x30] sm:$0xff]  ;;  %v974_v16 = vmul.f32 %v3268_v42, %v954_v12  ;;  %v1406_v42 = vld [vmem:[#allocation17] sm:$0xf] }
 0x30d   : > { %v1068_v15 = vld [vmem:[#allocation3 + $0x31] sm:$0xff]  ;;  %1128 = vrot.lane.b32.xlu1 %v1118_v13, %s2627_s5  ;;  %v988_v17 = vadd.f32 %v3270_v44, %v975_v11  ;;  %v1117_v18 = vld [vmem:[#allocation3 + $0x20] sm:$0xff]  ;;  %1064 = vst.msk [vmem:[#allocation4 + $0x18] sm:$0xff] %vm1050_vm3, %v1118_v13  ;;  %1940 = vmatprep.subr.msk.mxu0 %vm864_vm1, %v1406_v42 }
 0x30e   : > { %1079 = vrot.lane.b32.xlu0 %v1068_v15, %s2622_s27  ;;  %v987_v19 = vadd.f32 %v3270_v44, %v974_v16  ;;  %1063 = vst.msk [vmem:[#allocation4 + $0x10] sm:$0xff] %vm1050_vm3, %v1117_v18  ;;  %v1093_v21 = vld [vmem:[#allocation3 + $0x32] sm:$0xff]  ;;  %v1067_v33 = vld [vmem:[#allocation3 + $0x21] sm:$0xff]  ;;  %1941 = vmatpush3.msk.msra.mxu0 %vm864_vm1, %v1406_v42  ;;  %vm1110_vm1 = vcmask 195712  }
 0x30f   : > { %v994_v20 = vmax.f32 %v988_v17, 0.0  ;;  %v1092_v37 = vld [vmem:[#allocation3 + $0x22] sm:$0xff]  ;;  %1943 = vmatmul.mubr.msk.f32.vlgmr.msra.gmra.mrb[6].mxu0 %vm520_vm0, %v3147_v24 }
 0x310   : > { %v993_v22 = vmax.f32 %v987_v19, 0.0  ;;  %1945 = vmatprep.mubr.msk.f32.mxu0 %vm520_vm0, %v3157_v30 }
 0x311   : > { %1153 = vrot.lane.b32.xlu1 %v1068_v15, %s2629_s2  ;;  %v1036_v23 = vsel %vm1018_vm15, %v994_v20, 0.0 }
 0x312   : > { %1104 = vrot.lane.b32.xlu0 %v1093_v21, %s2625_s20  ;;  %1056 = vst.msk [vmem:[#allocation3 + $0x51] sm:$0xff] %vm1050_vm3, %v1036_v23  ;;  %v1035_v25 = vsel %vm1017_vm2, %v993_v22, 0.0  ;;  %v1856_v23 = vld [vmem:[#allocation19] ss:$0 sm:$0xff] }
 0x313   : > { %1055 = vst.msk [vmem:[#allocation3 + $0x41] sm:$0xff] %vm1050_vm3, %v1035_v25  ;;  %1946 = vmatmul.mubr.msk.f32.gmra.mrb[8].mxu0 %vm520_vm0, %v3185_v39  ;;  %vm1085_vm0 = vcmask 130112  }
 0x315   : > { %1178 = vrot.lane.b32.xlu1 %v1093_v21, %s2631_s1 }
 0x316   : > { %1202 = vrot.lane.b32.xlu0 %v1118_v13, %s2632_s24 }
 0x319   : > { %1126 = vrot.lane.b32.xlu1 %v1117_v18, %s2627_s5  ;;  %v1195_v45 = vld [vmem:[#allocation3 + $0x50] sm:$0xff] }
 0x31a   : > { %1227 = vrot.lane.b32.xlu0 %v1068_v15, %s2633_s25  ;;  %v1119_v43 = vld [vmem:[#allocation3 + $0x40] sm:$0xff]  ;;  %v1220_v24 = vld [vmem:[#allocation3 + $0x51] sm:$0xff] }
 0x31b   : > { %v1144_v44 = vld [vmem:[#allocation3 + $0x41] sm:$0xff]  ;;  %v1245_v30 = vld [vmem:[#allocation3 + $0x52] sm:$0xff] }
 0x31c   : > { %v1169_v46 = vld [vmem:[#allocation3 + $0x42] sm:$0xff] }
 0x31d   : > { %1077 = vrot.lane.b32.xlu1 %v1067_v33, %s2622_s27 }
 0x31e   : > { %1252 = vrot.lane.b32.xlu0 %v1093_v21, %s2634_s12 }
 0x321   : > { %1102 = vrot.lane.b32.xlu1 %v1092_v37, %s2625_s20  ;;  %s3522_s20 = sld [smem:[#allocation34_spill]] }
 0x322   : > { %1151 = vrot.lane.b32.xlu0 %v1067_v33, %s2629_s2 }
 0x325   : > { %1200 = vrot.lane.b32.xlu1 %v1117_v18, %s2632_s24 }
 0x326   : > { %1176 = vrot.lane.b32.xlu0 %v1092_v37, %s2631_s1 }
 0x327   : > { %s1860_s16 = sshll.u32 %s3522_s20, 3 }
 0x329   : > { %1225 = vrot.lane.b32.xlu1 %v1067_v33, %s2633_s25 }
 0x32a   : > { %1130 = vrot.lane.b32.xlu0 %v1119_v43, %s2627_s5  ;;  %s508_s5 = scalar_lea.vmem [#allocation22], %s1777_s4  ;;  %s2635_s4 = smov [#allocation22]  }
 0x32d   : > { %1250 = vrot.lane.b32.xlu1 %v1092_v37, %s2634_s12 }
 0x32e   : > { %1155 = vrot.lane.b32.xlu0 %v1144_v44, %s2629_s2  ;;  %s1554_s2 = sadd.s32 %s1860_s16, %s1778_s19  ;;  %s2470_s16 = sshll.u32 %s2635_s4, 4  ;;  %s2471_s16 = int_to_ptr.vmem [resolvable:$false] %s2470_s16 }
 0x32f   : > { %s1861_s28 = sshll.u32 %s1554_s2, 7  ;;  %s2472_s2 = scalar_lea.vmem %s2471_s16, 1024 }
 0x331   : > { %1206 = vrot.lane.b32.xlu1 %v1195_v45, %s2632_s24 }
 0x332   : > { %1204 = vrot.lane.b32.xlu0 %v1119_v43, %s2632_s24 }
 0x335   : > { %1231 = vrot.lane.b32.xlu1 %v1220_v24, %s2633_s25 }
 0x336   : > { %1229 = vrot.lane.b32.xlu0 %v1144_v44, %s2633_s25 }
 0x339   : > { %1180 = vrot.lane.b32.xlu1 %v1169_v46, %s2631_s1  ;;  %s1557_s1 = sshll.u32 %s508_s5, 4  ;;  %s3383_s1 = int_to_ptr.vmem [resolvable:$true] %s1557_s1 }
 0x33a   : > { %1254 = vrot.lane.b32.xlu0 %v1169_v46, %s2634_s12  ;;  %s2466_s19 = scalar_lea.vmem %s3383_s1, 512  ;;  %p2473_p9 = scmp.lt.s32.totalorder %s3383_s1, %s2471_s16 }
 0x33b   : > { %p2467_p0 = scmp.ne.s32.totalorder %s3383_s1, %s2466_s19  ;;  %p2474_p7 = scmp.lt.s32.totalorder %s2472_s2, %s2466_s19 }
 0x33d   : > { %1256 = vrot.lane.b32.xlu1 %v1245_v30, %s2634_s12  ;;  %s3523_s12 = sld [smem:[#allocation43_spill]]  ;;  %p2468_p5 = pnand %p2467_p0, %p3524_p3 }
 0x33e   : > { %p2475_p1 = por %p2474_p7, %p2473_p9 }
 0x33f   : > { %p2469_p2 = pneg %p2468_p5 }
 0x341   : > { %p2476_p11 = pnand %p2475_p1, %p2469_p2 }
 0x343   : > { %s3381_s20 = scalar_lea.hbm %s3523_s12, %s1861_s28 }
 0x35f   : > { %v1125_v39 = vpop.permute.xlu0 %1124 }
 0x360   : > { %v1076_v47 = vpop.permute.xlu1 %1075 }
 0x361   : > { %1087 = vst.msk [vmem:[#allocation4 + $0x8] sm:$0xff] %vm1085_vm0, %v1076_v47 }
 0x363   : > { %v1150_v48 = vpop.permute.xlu0 %1149 }
 0x364   : > { %v1101_v49 = vpop.permute.xlu1 %1100 }
 0x365   : > { %1112 = vst.msk [vmem:[#allocation4 + $0x8] sm:$0xff] %vm1110_vm1, %v1101_v49 }
 0x367   : > { %v1074_v50 = vpop.permute.xlu0 %1073 }
 0x368   : > { %1086 = vst.msk [vmem:[#allocation4] sm:$0xff] %vm1085_vm0, %v1074_v50  ;;  %v1175_v52 = vpop.permute.xlu1 %1174 }
 0x36b   : > { %v1099_v51 = vpop.permute.xlu0 %1098 }
 0x36c   : > { %1111 = vst.msk [vmem:[#allocation4] sm:$0xff] %vm1110_vm1, %v1099_v51 }
 0x36d   : > { %1137 = vst.msk [vmem:[#allocation4] sm:$0xff] %vm1136_vm4, %v1125_v39 }
 0x36e   : > { %1162 = vst.msk [vmem:[#allocation4] sm:$0xff] %vm1161_vm5, %v1150_v48 }
 0x36f   : > { %1187 = vst.msk [vmem:[#allocation4] sm:$0xff] %vm1186_vm6, %v1175_v52 }
 0x37f   : > { %v1129_v53 = vpop.permute.xlu1 %1128 }
 0x380   : > { %v1080_v54 = vpop.permute.xlu0 %1079 }
 0x381   : > { %1089 = vst.msk [vmem:[#allocation4 + $0x18] sm:$0xff] %vm1085_vm0, %v1080_v54 }
 0x383   : > { %v1154_v55 = vpop.permute.xlu1 %1153 }
 0x384   : > { %v1105_v56 = vpop.permute.xlu0 %1104 }
 0x385   : > { %1114 = vst.msk [vmem:[#allocation4 + $0x18] sm:$0xff] %vm1110_vm1, %v1105_v56 }
 0x387   : > { %v1179_v57 = vpop.permute.xlu1 %1178 }
 0x388   : > { %v1203_v58 = vpop.permute.xlu0 %1202 }
 0x38b   : > { %v1127_v60 = vpop.permute.xlu1 %1126 }
 0x38c   : > { %v1228_v59 = vpop.permute.xlu0 %1227  ;;  %1138 = vst.msk [vmem:[#allocation4 + $0x8] sm:$0xff] %vm1136_vm4, %v1127_v60 }
 0x38f   : > { %v1078_v62 = vpop.permute.xlu1 %1077 }
 0x390   : > { %v1253_v61 = vpop.permute.xlu0 %1252  ;;  %1088 = vst.msk [vmem:[#allocation4 + $0x10] sm:$0xff] %vm1085_vm0, %v1078_v62 }
 0x393   : > { %v1103_v0 = vpop.permute.xlu1 %1102 }
 0x394   : > { %v1152_v63 = vpop.permute.xlu0 %1151  ;;  %1113 = vst.msk [vmem:[#allocation4 + $0x10] sm:$0xff] %vm1110_vm1, %v1103_v0 }
 0x395   : > { %1163 = vst.msk [vmem:[#allocation4 + $0x8] sm:$0xff] %vm1161_vm5, %v1152_v63 }
 0x396   : > { %1139 = vst.msk [vmem:[#allocation4 + $0x10] sm:$0xff] %vm1136_vm4, %v1129_v53 }
 0x397   : > { %1164 = vst.msk [vmem:[#allocation4 + $0x10] sm:$0xff] %vm1161_vm5, %v1154_v55  ;;  %v1201_v2 = vpop.permute.xlu1 %1200 }
 0x398   : > { %v1177_v1 = vpop.permute.xlu0 %1176  ;;  %1189 = vst.msk [vmem:[#allocation4 + $0x10] sm:$0xff] %vm1186_vm6, %v1179_v57 }
 0x399   : > { %1188 = vst.msk [vmem:[#allocation4 + $0x8] sm:$0xff] %vm1186_vm6, %v1177_v1 }
 0x39a   : > { %1213 = vst.msk [vmem:[#allocation4] sm:$0xff] %vm1212_vm7, %v1201_v2  ;;  %1214 = vst.msk [vmem:[#allocation4 + $0x8] sm:$0xff] %vm1212_vm7, %v1203_v58 }
 0x39b   : > { %1239 = vst.msk [vmem:[#allocation4 + $0x8] sm:$0xff] %vm1237_vm8, %v1228_v59  ;;  %v1226_v3 = vpop.permute.xlu1 %1225 }
 0x39c   : > { %v1131_v4 = vpop.permute.xlu0 %1130  ;;  %1264 = vst.msk [vmem:[#allocation4 + $0x8] sm:$0xff] %vm1262_vm9, %v1253_v61 }
 0x39d   : > { %1238 = vst.msk [vmem:[#allocation4] sm:$0xff] %vm1237_vm8, %v1226_v3 }
 0x39e   : > { %1140 = vst.msk [vmem:[#allocation4 + $0x18] sm:$0xff] %vm1136_vm4, %v1131_v4 }
 0x39f   : > { %v1251_v5 = vpop.permute.xlu1 %1250 }
 0x3a0   : > { %v1156_v6 = vpop.permute.xlu0 %1155  ;;  %1263 = vst.msk [vmem:[#allocation4] sm:$0xff] %vm1262_vm9, %v1251_v5 }
 0x3a1   : > { %1165 = vst.msk [vmem:[#allocation4 + $0x18] sm:$0xff] %vm1161_vm5, %v1156_v6 }
 0x3a3   : > { %v1207_v7 = vpop.permute.xlu1 %1206  ;;  %v1268_v12 = vld [vmem:[#allocation4 + $0x8] sm:$0xff] }
 0x3a4   : > { %v1205_v8 = vpop.permute.xlu0 %1204 }
 0x3a5   : > { %1215 = vst.msk [vmem:[#allocation4 + $0x10] sm:$0xff] %vm1212_vm7, %v1205_v8 }
 0x3a7   : > { %v1232_v9 = vpop.permute.xlu1 %1231  ;;  %v1267_v11 = vld [vmem:[#allocation4] sm:$0xff] }
 0x3a8   : > { %v1230_v10 = vpop.permute.xlu0 %1229  ;;  %1934 = vmatprep.mubr.msk.f32.mxu1 %vm1280_vm10, %v1267_v11 }
 0x3a9   : > { %1240 = vst.msk [vmem:[#allocation4 + $0x10] sm:$0xff] %vm1237_vm8, %v1230_v10  ;;  %1935 = vmatmul.mubr.msk.f32.vlgmr.msra.gmra.mrb[0].mxu1 %vm1280_vm10, %v1268_v12 }
 0x3ab   : > { %v1181_v13 = vpop.permute.xlu1 %1180 }
 0x3ac   : > { %v1255_v15 = vpop.permute.xlu0 %1254  ;;  %1190 = vst.msk [vmem:[#allocation4 + $0x18] sm:$0xff] %vm1186_vm6, %v1181_v13 }
 0x3ad   : > { %1265 = vst.msk [vmem:[#allocation4 + $0x10] sm:$0xff] %vm1262_vm9, %v1255_v15 }
 0x3ae   : > { %1216 = vst.msk [vmem:[#allocation4 + $0x18] sm:$0xff] %vm1212_vm7, %v1207_v7 }
 0x3af   : > { %1241 = vst.msk [vmem:[#allocation4 + $0x18] sm:$0xff] %vm1237_vm8, %v1232_v9  ;;  %v1257_v16 = vpop.permute.xlu1 %1256 }
 0x3b0   : > { %1266 = vst.msk [vmem:[#allocation4 + $0x18] sm:$0xff] %vm1262_vm9, %v1257_v16 }
 0x3b4   : > { %v1269_v17 = vld [vmem:[#allocation4 + $0x10] sm:$0xff] }
 0x3b5   : > { %1937 = vmatprep.mubr.msk.f32.mxu1 %vm1280_vm10, %v1269_v17 }
 0x3b7   : > { %v1270_v18 = vld [vmem:[#allocation4 + $0x18] sm:$0xff] }
 0x3b8   : > { %1938 = vmatmul.mubr.msk.f32.gmra.mrb[2].mxu1 %vm1280_vm10, %v1270_v18 }
 0x3e2   : > { %v1944_v19 = vpop.f32.mrb[6].mxu0 }
 0x3e3   : > { %v1488_v20 = vpop.f32.mrb[7].mxu0  ;;  %v1515_v25 = vmul.f32 %v1944_v19, %v1856_v23 }
 0x3e4   : > { %v1514_v28 = vmul.f32 %v1856_v23, %v1488_v20 }
 0x3e5   : > { %v1526_v33 = vadd.f32 %v1857_v27, %v1515_v25 }
 0x3e6   : > { %v1947_v21 = vpop.f32.mrb[8].mxu0  ;;  %v1525_v36 = vadd.f32 %v1857_v27, %v1514_v28 }
 0x3e7   : > { %v1498_v22 = vpop.f32.mrb[9].mxu0  ;;  %v1517_v43 = vmul.f32 %v1947_v21, %v1856_v23 }
 0x3e8   : > { %v1516_v44 = vmul.f32 %v1856_v23, %v1498_v22 }
 0x3e9   : > { %v1528_v24 = vadd.f32 %v1857_v27, %v1517_v43 }
 0x3ea   : > { %v1527_v39 = vadd.f32 %v1857_v27, %v1516_v44 }
 0x47c   : > { %v1936_v29 = vpop.f32.mrb[0].mxu1 }
 0x47d   : > { %v1386_v32 = vmul.f32 %v1936_v29, %v1843_v26  ;;  %v1359_v34 = vpop.f32.mrb[1].mxu1 }
 0x47e   : > { %v1385_v35 = vmul.f32 %v1843_v26, %v1359_v34 }
 0x47f   : > { %v1397_v37 = vadd.f32 %v1844_v31, %v1386_v32 }
 0x480   : > { %v1396_v38 = vadd.f32 %v1844_v31, %v1385_v35 }
 0x481   : > { %v1530_v40 = vadd.f32 %v1526_v33, %v1397_v37 }
 0x482   : > { %v1529_v41 = vadd.f32 %v1525_v36, %v1396_v38 }
 0x483   : > { %v1534_v14 = vmax.f32 %v1530_v40, 0.0 }
 0x484   : > { %v1533_v42 = vmax.f32 %v1529_v41, 0.0 }
 0x485   : > { %1538 = vst.msk [vmem:[%s508_s5 + $0x8] sm:$0xff] %vm1050_vm3, %v1534_v14 }
 0x486   : > { %1537 = vst.msk [vmem:[%s508_s5] sm:$0xff] %vm1050_vm3, %v1533_v42 }
 0x48b   : > { %v1939_v45 = vpop.f32.mrb[2].mxu1 }
 0x48c   : > { %v1388_v46 = vmul.f32 %v1939_v45, %v1843_v26  ;;  %v1369_v30 = vpop.f32.mrb[3].mxu1 }
 0x48d   : > { %v1387_v47 = vmul.f32 %v1843_v26, %v1369_v30 }
 0x48e   : > { %v1399_v48 = vadd.f32 %v1844_v31, %v1388_v46 }
 0x48f   : > { %v1398_v49 = vadd.f32 %v1844_v31, %v1387_v47 }
 0x490   : > { %v1532_v50 = vadd.f32 %v1528_v24, %v1399_v48 }
 0x491   : > { %v1531_v51 = vadd.f32 %v1527_v39, %v1398_v49 }
 0x492   : > { %v1536_v52 = vmax.f32 %v1532_v50, 0.0 }
 0x493   : > { %v1535_v53 = vmax.f32 %v1531_v51, 0.0 }
 0x494   : > { %1540 = vst.msk [vmem:[%s508_s5 + $0x18] sm:$0xff] %vm1050_vm3, %v1536_v52 }
 0x495   : > { %1539 = vst.msk [vmem:[%s508_s5 + $0x10] sm:$0xff] %vm1050_vm3, %v1535_v53 }
 0x496   : > { %2479 = shalt.err (!%p2476_p11)
}
 0x497   : > { %s2480_s11 = scalar_lea.hbm %s3381_s20, 512  ;;  %s2484_s28 = scalar_lea.hbm %s3523_s12, 2048 }
 0x498   : > { %p2481_p13 = scmp.ne.s32.totalorder %s3381_s20, %s2480_s11  ;;  %p2485_p8 = scmp.lt.u32.totalorder %s3381_s20, %s3523_s12 }
 0x499   : > { %p2486_p12 = scmp.lt.u32.totalorder %s2484_s28, %s2480_s11  ;;  %p2488_p0 = scmp.lt.u32.totalorder %s2480_s11, %s3381_s20 }
 0x49a   : > { %p2482_p4 = pnand %p2481_p13, %p3524_p3 }
 0x49b   : > { %p2487_p10 = por %p2486_p12, %p2485_p8 }
 0x49c   : > { %p2483_p6 = pneg %p2482_p4 }
 0x49d   : > { %p2489_p5 = por %p2488_p0, %p2487_p10 }
 0x49f   : > { %p2490_p2 = pnand %p2489_p5, %p2483_p6 }
 0x4a1   : > { %2493 = shalt.err (!%p2490_p2)
}
 0x4a2   : > { %s2636_s19 = smov 128  }
 0x4a3   : > { %2013 = dma.vmem_to_hbm [thread:$0]  (%p3524_p3), %s3383_s1, 512, %s3381_s20, %s3389_s15, %s2636_s19, %s2636_s19, %s2622_s27  }
 0x4a4 PF: > { %s3525_s4 = sld [smem:[#allocation30_spill]]  ;;  %p2070_p9 = scmp.ge.s32.totalorder %s2608_s23, 2 }
 0x4a5   : > { %p3526_p7 = scmp.ne.s32.totalorder %s3512_s3, 0 }
 0x4a7   : > { %p2048_p1 = pnand %p2070_p9, %p3526_p7 }
 0x4aa   : > { %s1572_s16 = sand.u32 1, %s3525_s4  }
 0x4ab   : > { %s1573_s2 = scalar_lea.sflag [#allocation7], %s1572_s16 }
 0x4ac   : > { %2563 = dma.done.wait (!%p2048_p1), %s1573_s2, 512  }
 0x4ad   : > { %2565 = vsyncadd (!%p2048_p1), %s1573_s2, 4294966784  ;;  %s31_s23 = sadd.s32 1, %s2608_s23   ;;  %s3527_s10 = sld [smem:[#allocation31_spill]] }
 0x4ae   : > { %p28_p11 = scmp.ge.s32.totalorder %s31_s23, 6   ;;  %s3528_s14 = sld [smem:[#allocation32_spill]] }
 0x4af   : > { %s3529_s11 = smov %s3546_s13  ;;  %s3532_s16 = smov %s2584_s17 }
 0x4b0   : > { %s3531_s15 = smov %s3529_s11  ;;  %s3533_s17 = smov %s2588_s18 }
 0x4b1   : > { %s3534_s18 = smov %s3000_s0  ;;  %s3535_s19 = smov %s2600_s21 }
 0x4b2   : > { %s3536_s20 = smov %s2604_s22  ;;  %s3537_s21 = smov %s3540_s29 }
 0x4b3   : > { %s3530_s13 = smov %s3527_s10  ;;  %s3538_s22 = smov %s3544_s26 }
 0x4b4   :  { %30 = sbr.rel (!%p28_p11) target bundleno = 22 (0x16), region = 150 }
 0x4bb   :  { %1578 = vsyncpa [#allocation6], 1 }
 0x4bc   :  { %1580 = vsyncpa [#allocation6 + $0x1], 1 }
 0x4bd   :  { %1581 = vsyncpa [#allocation9], 1 }
 0x4be   :  { %1582 = vsyncpa [#allocation12], 1 }
 0x4bf   :  { %1583 = vsyncpa [#allocation15], 1 }
 0x4c0   :  { %1584 = vsyncpa [#allocation18], 1 }
 0x4c1   :  { %1585 = vsyncpa [#allocation21], 1 }
 0x4c2   :  { %1586 = vsyncpa [#allocation7], 1 }
 0x4c3   :  { %1588 = vsyncpa [#allocation7 + $0x1], 1 }

</bundles_post_ra>
